<compile_context>
chip_gen: v7x
topology: tpu7x:2x2x1
jax: 0.10.0
libtpu: 0.0.40
codegen_flags: <defaults>
</compile_context>

<pallas_src>
import math

import jax
import jax.numpy as jnp
from jax.experimental import pallas as pl
from jax.experimental.pallas import tpu as pltpu

# ----- synthetic encoder config (small, consistent with the forward) -----
B, S, H = 2, 8, 32
NUM_HEADS = 2
HEAD_DIM = H // NUM_HEADS
FFN = 64
NUM_LAYERS = 2
VOCAB = 100
NUM_CLASSES = 4
LN_EPS = 1e-12
QKV = 3 * H        # 96
LANES = 128
assert QKV <= LANES and FFN <= LANES and H <= LANES and NUM_CLASSES <= LANES

# ----- packed weight-blob row layout (static; shared by packer and kernel) -----
# Per layer (all blocks zero-padded to 128 lanes, all row starts multiples of 8):
#   rows [  0,  32) : wqkv  [H, 3H]   (q|k|v, head-major columns; scale folded into q)
#   rows [ 32,  64) : wo    [H, H]    (rows ordered head-major to match ctx concat)
#   rows [ 64,  96) : w1    [H, FFN]
#   rows [ 96, 160) : w2    [FFN, H]
#   rows [160, 168) : 8 vector rows: bqkv, bo, b1, b2, ln1g, ln1b, ln2g, ln2b
# After the layers:
#   rows [336, 368) : wc    [H, 128]  (lanes >= NUM_CLASSES are zero -> lane-dense output)
#   rows [368, 376) : row 0 = bc padded to 128 lanes
ROW_WQKV = 0
ROW_WO = ROW_WQKV + H          # 32
ROW_W1 = ROW_WO + H            # 64
ROW_W2 = ROW_W1 + H            # 96
ROW_VEC = ROW_W2 + FFN         # 160
LAYER_ROWS = ROW_VEC + 8       # 168
ROW_WC = NUM_LAYERS * LAYER_ROWS   # 336
ROW_BC = ROW_WC + H                # 368
TOTAL_ROWS = ROW_BC + 8            # 376


def _gelu(x):
    c = 0.7978845608028654  # sqrt(2/pi)
    return 0.5 * x * (1.0 + jnp.tanh(c * (x + 0.044715 * x * x * x)))


def _layernorm(x, g, b):
    mu = jnp.mean(x, axis=-1, keepdims=True)
    xc = x - mu
    var = jnp.mean(xc * xc, axis=-1, keepdims=True)
    return xc * jax.lax.rsqrt(var + LN_EPS) * g + b


# ---------------- fused Pallas kernel ----------------

def fused_forward_kernel(x_ref, mb_ref, w_ref, o_ref):
    T = B * S
    x = x_ref[...]                                               # [T, H] activation slab
    # Mask broadcast hoisted: computed exactly once, reused by every layer/head.
    bias_b = jnp.broadcast_to(mb_ref[...][:, None, :], (B, S, S))

    for l in range(NUM_LAYERS):                 # static unroll; weights resident in VMEM
        base = l * LAYER_ROWS
        # ---- static ref slices into the packed blob (free) ----
        wqkv = w_ref[base + ROW_WQKV: base + ROW_WQKV + H, 0:QKV]   # [32, 96]
        wo   = w_ref[base + ROW_WO:   base + ROW_WO + H,   0:H]     # [32, 32]
        w1   = w_ref[base + ROW_W1:   base + ROW_W1 + H,   0:FFN]   # [32, 64]
        w2   = w_ref[base + ROW_W2:   base + ROW_W2 + FFN, 0:H]     # [64, 32]
        v0 = base + ROW_VEC
        bqkv = w_ref[v0 + 0: v0 + 1, 0:QKV]
        bo   = w_ref[v0 + 1: v0 + 2, 0:H]
        b1   = w_ref[v0 + 2: v0 + 3, 0:FFN]
        b2   = w_ref[v0 + 3: v0 + 4, 0:H]
        ln1g = w_ref[v0 + 4: v0 + 5, 0:H]
        ln1b = w_ref[v0 + 5: v0 + 6, 0:H]
        ln2g = w_ref[v0 + 6: v0 + 7, 0:H]
        ln2b = w_ref[v0 + 7: v0 + 8, 0:H]

        # ---- fused Q/K/V projection: one MXU matmul for both heads ----
        # (1/sqrt(HEAD_DIM) already folded into the q columns / bias at pack time)
        qkv = jnp.dot(x, wqkv, preferred_element_type=jnp.float32) + bqkv   # [T, 96]

        ctx_heads = []
        for n in range(NUM_HEADS):              # static unroll; single-vreg lane selects
            c0 = n * HEAD_DIM
            qh = qkv[:, c0: c0 + HEAD_DIM].reshape(B, S, HEAD_DIM)
            kh = qkv[:, H + c0: H + c0 + HEAD_DIM].reshape(B, S, HEAD_DIM)
            vh = qkv[:, 2 * H + c0: 2 * H + c0 + HEAD_DIM].reshape(B, S, HEAD_DIM)

            s = jnp.einsum('bqd,bkd->bqk', qh, kh,
                           preferred_element_type=jnp.float32) + bias_b
            m = jnp.max(s, axis=-1, keepdims=True)
            e = jnp.exp(s - m)
            # Deferred normalization: EUP reciprocal on [B,S,1], multiply [B,S,HD] ctx.
            inv = pl.reciprocal(jnp.sum(e, axis=-1, keepdims=True), approx=True)
            ctx_heads.append(jnp.einsum('bqk,bkd->bqd', e, vh,
                                        preferred_element_type=jnp.float32) * inv)

        # Lane-concatenate the per-head contexts -> ONE output-projection matmul.
        ctx = jnp.concatenate(ctx_heads, axis=-1).reshape(T, H)             # [T, 32]
        attn = jnp.dot(ctx, wo, preferred_element_type=jnp.float32) + bo
        h1 = _layernorm(x + attn, ln1g, ln1b)

        ff = _gelu(jnp.dot(h1, w1, preferred_element_type=jnp.float32) + b1)
        ff = jnp.dot(ff, w2, preferred_element_type=jnp.float32) + b2
        x = _layernorm(h1 + ff, ln2g, ln2b)

    # BertPoolingStrategy -> CLS token, then classifier Linear (lane-dense, 128 out lanes).
    cls = x.reshape(B, S, H)[:, 0, :]                                       # [B, H]
    wc = w_ref[ROW_WC: ROW_WC + H, :]                                       # [32, 128]
    bc = w_ref[ROW_BC: ROW_BC + 1, :]                                       # [1, 128]
    o_ref[...] = (jnp.dot(cls, wc, preferred_element_type=jnp.float32)
                  + bc).astype(o_ref.dtype)


# ---------------- weight packing (done once per call; in serving, once at load) ----------

def pack_params(params):
    L = NUM_LAYERS
    scale = 1.0 / math.sqrt(HEAD_DIM)

    def pad_lanes(a):
        return jnp.pad(a, [(0, 0)] * (a.ndim - 1) + [(0, LANES - a.shape[-1])])

    # [L, NH, H, HD] -> [L, H, NH*HD] with head-major columns; fold softmax scale into q.
    wq = params['wq'].transpose(0, 2, 1, 3).reshape(L, H, H) * scale
    wk = params['wk'].transpose(0, 2, 1, 3).reshape(L, H, H)
    wv = params['wv'].transpose(0, 2, 1, 3).reshape(L, H, H)
    wqkv = jnp.concatenate([wq, wk, wv], axis=-1)                 # [L, H, 96]
    bq = params['bq'].reshape(L, H) * scale
    bk = params['bk'].reshape(L, H)
    bv = params['bv'].reshape(L, H)
    bqkv = jnp.concatenate([bq, bk, bv], axis=-1)                 # [L, 96]
    wo = params['wo'].reshape(L, H, H)                            # [L, NH*HD, H]

    blocks = []
    for l in range(L):
        vec = jnp.stack([
            pad_lanes(bqkv[l]),
            pad_lanes(params['bo'][l, 0]),
            pad_lanes(params['b1'][l, 0]),
            pad_lanes(params['b2'][l, 0]),
            pad_lanes(params['ln1g'][l, 0]),
            pad_lanes(params['ln1b'][l, 0]),
            pad_lanes(params['ln2g'][l, 0]),
            pad_lanes(params['ln2b'][l, 0]),
        ])                                                        # [8, 128]
        blocks += [pad_lanes(wqkv[l]), pad_lanes(wo[l]),
                   pad_lanes(params['w1'][l]), pad_lanes(params['w2'][l]), vec]

    blocks.append(pad_lanes(params['wc']))                        # [32, 128]
    bc_rows = jnp.zeros((8, LANES), jnp.float32).at[0, :NUM_CLASSES].set(params['bc'][0])
    blocks.append(bc_rows)                                        # [8, 128]

    blob = jnp.concatenate(blocks, axis=0)
    assert blob.shape == (TOTAL_ROWS, LANES)
    return blob.astype(jnp.float32)


# ---------------- wrapper ----------------

def forward_pallas(params, input_ids, attention_mask):
    # TODO(synk): embedding gather (token ids -> vectors) stays in plain JAX glue; the
    # original module's HF embedding lookup has no compute worth a dedicated kernel.
    x = params['tok_emb'][input_ids] + params['pos_emb'][None, :, :]
    x2d = x.reshape(B * S, H).astype(jnp.float32)
    # Additive key-mask bias (broadcast to [B,S,S] is hoisted inside the kernel).
    mask_bias = (1.0 - attention_mask.astype(jnp.float32)) * -1e9          # [B, S]
    blob = pack_params(params)                                             # [376, 128]

    # Advisory cost hint so XLA schedules the tiny custom call sensibly.
    T = B * S
    flops_layer = (2 * T * H * QKV                          # fused qkv projection
                   + NUM_HEADS * (2 * B * S * S * HEAD_DIM * 2)  # scores + ctx
                   + 2 * T * H * H                           # output projection
                   + 2 * T * H * FFN * 2)                    # FFN
    flops = NUM_LAYERS * flops_layer + 2 * B * H * LANES
    transcendentals = NUM_LAYERS * (NUM_HEADS * B * S * S    # exp
                                    + T * FFN                # gelu tanh
                                    + 2 * T                  # layernorm rsqrt
                                    + NUM_HEADS * B * S)     # softmax reciprocal
    bytes_accessed = (x2d.size + mask_bias.size + blob.size + B * LANES) * 4

    logits_full = pl.pallas_call(
        fused_forward_kernel,
        out_shape=jax.ShapeDtypeStruct((B, LANES), jnp.float32),
        in_specs=[pl.BlockSpec(memory_space=pltpu.MemorySpace.VMEM)] * 3,
        out_specs=pl.BlockSpec(memory_space=pltpu.MemorySpace.VMEM),
        cost_estimate=pl.CostEstimate(flops=flops,
                                      transcendentals=transcendentals,
                                      bytes_accessed=bytes_accessed),
    )(x2d, mask_bias, blob)
    return logits_full[:, :NUM_CLASSES]


# ---------------- pure-JAX reference (for correctness check) ----------------

def forward_ref(params, input_ids, attention_mask):
    x = params['tok_emb'][input_ids] + params['pos_emb'][None]
    mask = attention_mask.astype(jnp.float32)
    bias = (1.0 - mask) * -1e9                                   # [B, S]
    for l in range(NUM_LAYERS):
        q = jnp.einsum('bsc,ncd->bnsd', x, params['wq'][l]) + params['bq'][l][None]
        k = jnp.einsum('bsc,ncd->bnsd', x, params['wk'][l]) + params['bk'][l][None]
        v = jnp.einsum('bsc,ncd->bnsd', x, params['wv'][l]) + params['bv'][l][None]
        s = jnp.einsum('bnqd,bnkd->bnqk', q, k) / math.sqrt(HEAD_DIM)
        s = s + bias[:, None, None, :]
        p = jax.nn.softmax(s, axis=-1)
        ctx = jnp.einsum('bnqk,bnkd->bnqd', p, v)
        attn = jnp.einsum('bnqd,ndh->bqh', ctx, params['wo'][l]) + params['bo'][l][None]
        h1 = _layernorm(x + attn, params['ln1g'][l], params['ln1b'][l])
        ff = _gelu(h1 @ params['w1'][l] + params['b1'][l]) @ params['w2'][l] + params['b2'][l]
        x = _layernorm(h1 + ff, params['ln2g'][l], params['ln2b'][l])
    cls = x[:, 0, :]
    return cls @ params['wc'] + params['bc']


# ---------------- deterministic parameter init ----------------

def init_params(key):
    # TODO(synk): the original module loads pretrained HF weights / tokenizer; here we
    # deterministically initialize a synthetic encoder of the same structure.
    def nrm(k, shape, scale=0.02):
        return (scale * jax.random.normal(k, shape)).astype(jnp.float32)

    keys = iter(jax.random.split(key, 32))
    L, NH, HD = NUM_LAYERS, NUM_HEADS, HEAD_DIM
    return {
        'tok_emb': nrm(next(keys), (VOCAB, H)),
        'pos_emb': nrm(next(keys), (S, H)),
        'wq': nrm(next(keys), (L, NH, H, HD)),
        'bq': nrm(next(keys), (L, NH, 1, HD)),
        'wk': nrm(next(keys), (L, NH, H, HD)),
        'bk': nrm(next(keys), (L, NH, 1, HD)),
        'wv': nrm(next(keys), (L, NH, H, HD)),
        'bv': nrm(next(keys), (L, NH, 1, HD)),
        'wo': nrm(next(keys), (L, NH, HD, H)),
        'bo': nrm(next(keys), (L, 1, H)),
        'ln1g': 1.0 + nrm(next(keys), (L, 1, H)),
        'ln1b': nrm(next(keys), (L, 1, H)),
        'w1': nrm(next(keys), (L, H, FFN)),
        'b1': nrm(next(keys), (L, 1, FFN)),
        'w2': nrm(next(keys), (L, FFN, H)),
        'b2': nrm(next(keys), (L, 1, H)),
        'ln2g': 1.0 + nrm(next(keys), (L, 1, H)),
        'ln2b': nrm(next(keys), (L, 1, H)),
        'wc': nrm(next(keys), (H, NUM_CLASSES)),
        'bc': nrm(next(keys), (1, NUM_CLASSES)),
    }


if __name__ == "__main__":
    key = jax.random.PRNGKey(0)
    pkey, ikey = jax.random.split(key)
    params = init_params(pkey)

    input_ids = jax.random.randint(ikey, (B, S), 0, VOCAB)
    attention_mask = jnp.ones((B, S), jnp.float32).at[1, 6:].set(0.0)  # padded tail in batch 1

    fwd = jax.jit(forward_pallas)
    logits = jax.block_until_ready(fwd(params, input_ids, attention_mask))

    ref = forward_ref(params, input_ids, attention_mask)
    assert logits.shape == (B, NUM_CLASSES)
    assert jnp.allclose(logits, ref, rtol=1e-4, atol=1e-4), (logits, ref)

    print("KERNEL_OK")
</pallas_src>

<mosaic_0001>
module attributes {stable_mosaic.version = 11 : i64} {
  func.func @fused_forward_kernel(%arg0: memref<16x32xf32, #tpu.memory_space<vmem>>, %arg1: memref<2x8xf32, #tpu.memory_space<vmem>>, %arg2: memref<376x128xf32, #tpu.memory_space<vmem>>, %arg3: memref<2x128xf32, #tpu.memory_space<vmem>>) attributes {dimension_semantics = [], scalar_prefetch = 0 : i64, scratch_operands = 0 : i64, tpu.core_type = #tpu.core_type<tc>} {
    %c0 = arith.constant 0 : index
    %c0_0 = arith.constant 0 : index
    %0 = vector.load %arg0[%c0, %c0_0] : memref<16x32xf32, #tpu.memory_space<vmem>>, vector<16x32xf32>
    %c0_1 = arith.constant 0 : index
    %c0_2 = arith.constant 0 : index
    %1 = vector.load %arg1[%c0_1, %c0_2] : memref<2x8xf32, #tpu.memory_space<vmem>>, vector<2x8xf32>
    %2 = vector.shape_cast %1 : vector<2x8xf32> to vector<2x1x8xf32>
    %3 = vector.shape_cast %2 : vector<2x1x8xf32> to vector<2x1x8xf32>
    %4 = vector.broadcast %3 : vector<2x1x8xf32> to vector<2x8x8xf32>
    %c0_3 = arith.constant 0 : index
    %c0_4 = arith.constant 0 : index
    %5 = vector.load %arg2[%c0_3, %c0_4] : memref<376x128xf32, #tpu.memory_space<vmem>>, vector<32x96xf32>
    %c32 = arith.constant 32 : index
    %c0_5 = arith.constant 0 : index
    %6 = vector.load %arg2[%c32, %c0_5] : memref<376x128xf32, #tpu.memory_space<vmem>>, vector<32x32xf32>
    %c64 = arith.constant 64 : index
    %c0_6 = arith.constant 0 : index
    %7 = vector.load %arg2[%c64, %c0_6] : memref<376x128xf32, #tpu.memory_space<vmem>>, vector<32x64xf32>
    %c96 = arith.constant 96 : index
    %c0_7 = arith.constant 0 : index
    %8 = vector.load %arg2[%c96, %c0_7] : memref<376x128xf32, #tpu.memory_space<vmem>>, vector<64x32xf32>
    %c160 = arith.constant 160 : index
    %c0_8 = arith.constant 0 : index
    %9 = vector.load %arg2[%c160, %c0_8] : memref<376x128xf32, #tpu.memory_space<vmem>>, vector<1x96xf32>
    %c161 = arith.constant 161 : index
    %c0_9 = arith.constant 0 : index
    %10 = vector.load %arg2[%c161, %c0_9] : memref<376x128xf32, #tpu.memory_space<vmem>>, vector<1x32xf32>
    %c162 = arith.constant 162 : index
    %c0_10 = arith.constant 0 : index
    %11 = vector.load %arg2[%c162, %c0_10] : memref<376x128xf32, #tpu.memory_space<vmem>>, vector<1x64xf32>
    %c163 = arith.constant 163 : index
    %c0_11 = arith.constant 0 : index
    %12 = vector.load %arg2[%c163, %c0_11] : memref<376x128xf32, #tpu.memory_space<vmem>>, vector<1x32xf32>
    %c164 = arith.constant 164 : index
    %c0_12 = arith.constant 0 : index
    %13 = vector.load %arg2[%c164, %c0_12] : memref<376x128xf32, #tpu.memory_space<vmem>>, vector<1x32xf32>
    %c165 = arith.constant 165 : index
    %c0_13 = arith.constant 0 : index
    %14 = vector.load %arg2[%c165, %c0_13] : memref<376x128xf32, #tpu.memory_space<vmem>>, vector<1x32xf32>
    %c166 = arith.constant 166 : index
    %c0_14 = arith.constant 0 : index
    %15 = vector.load %arg2[%c166, %c0_14] : memref<376x128xf32, #tpu.memory_space<vmem>>, vector<1x32xf32>
    %c167 = arith.constant 167 : index
    %c0_15 = arith.constant 0 : index
    %16 = vector.load %arg2[%c167, %c0_15] : memref<376x128xf32, #tpu.memory_space<vmem>>, vector<1x32xf32>
    %cst = arith.constant dense<0.000000e+00> : vector<16x96xf32>
    %17 = tpu.matmul %0, %5, %cst {dimension_numbers = #tpu.dot_dimension_numbers<[1], [0], [0], [1], [0, 0, 1, 1], [], []>} : vector<16x32xf32>, vector<32x96xf32>, vector<16x96xf32> -> vector<16x96xf32>
    %18 = vector.broadcast %9 : vector<1x96xf32> to vector<16x96xf32>
    %19 = arith.addf %17, %18 : vector<16x96xf32>
    %20 = vector.extract_strided_slice %19 {offsets = [0, 0], sizes = [16, 16], strides = [1, 1]} : vector<16x96xf32> to vector<16x16xf32>
    %21 = vector.shape_cast %20 : vector<16x16xf32> to vector<2x8x16xf32>
    %22 = vector.extract_strided_slice %19 {offsets = [0, 32], sizes = [16, 16], strides = [1, 1]} : vector<16x96xf32> to vector<16x16xf32>
    %23 = vector.shape_cast %22 : vector<16x16xf32> to vector<2x8x16xf32>
    %24 = vector.extract_strided_slice %19 {offsets = [0, 64], sizes = [16, 16], strides = [1, 1]} : vector<16x96xf32> to vector<16x16xf32>
    %25 = vector.shape_cast %24 : vector<16x16xf32> to vector<2x8x16xf32>
    "tpu.trace_start"() <{level = 10 : i32, message = "bqd,bkd->bqk"}> : () -> ()
    %cst_16 = arith.constant dense<0.000000e+00> : vector<2x8x8xf32>
    %26 = tpu.matmul %21, %23, %cst_16 {dimension_numbers = #tpu.dot_dimension_numbers<[2], [2], [1], [1], [0, 0, 0, 1, 1, 1], [0], [0]>} : vector<2x8x16xf32>, vector<2x8x16xf32>, vector<2x8x8xf32> -> vector<2x8x8xf32>
    "tpu.trace_stop"() : () -> ()
    %27 = arith.addf %26, %4 : vector<2x8x8xf32>
    %cst_17 = arith.constant dense<0xFF800000> : vector<2x8xf32>
    %28 = vector.multi_reduction <maximumf>, %27, %cst_17 [2] : vector<2x8x8xf32> to vector<2x8xf32>
    %29 = vector.shape_cast %28 : vector<2x8xf32> to vector<2x8x1xf32>
    %30 = vector.broadcast %29 : vector<2x8x1xf32> to vector<2x8x8xf32>
    %31 = arith.subf %27, %30 : vector<2x8x8xf32>
    %32 = math.exp %31 : vector<2x8x8xf32>
    %cst_18 = arith.constant dense<0.000000e+00> : vector<2x8xf32>
    %33 = vector.multi_reduction <add>, %32, %cst_18 [2] : vector<2x8x8xf32> to vector<2x8xf32>
    %34 = vector.shape_cast %33 : vector<2x8xf32> to vector<2x8x1xf32>
    %35 = tpu.reciprocal %34 {approx = true} : vector<2x8x1xf32> -> vector<2x8x1xf32>
    "tpu.trace_start"() <{level = 10 : i32, message = "bqk,bkd->bqd"}> : () -> ()
    %cst_19 = arith.constant dense<0.000000e+00> : vector<2x8x16xf32>
    %36 = tpu.matmul %32, %25, %cst_19 {dimension_numbers = #tpu.dot_dimension_numbers<[2], [1], [1], [2], [0, 0, 0, 1, 1, 2], [0], [0]>} : vector<2x8x8xf32>, vector<2x8x16xf32>, vector<2x8x16xf32> -> vector<2x8x16xf32>
    "tpu.trace_stop"() : () -> ()
    %37 = vector.broadcast %35 : vector<2x8x1xf32> to vector<2x8x16xf32>
    %38 = arith.mulf %36, %37 : vector<2x8x16xf32>
    %39 = vector.extract_strided_slice %19 {offsets = [0, 16], sizes = [16, 16], strides = [1, 1]} : vector<16x96xf32> to vector<16x16xf32>
    %40 = vector.shape_cast %39 : vector<16x16xf32> to vector<2x8x16xf32>
    %41 = vector.extract_strided_slice %19 {offsets = [0, 48], sizes = [16, 16], strides = [1, 1]} : vector<16x96xf32> to vector<16x16xf32>
    %42 = vector.shape_cast %41 : vector<16x16xf32> to vector<2x8x16xf32>
    %43 = vector.extract_strided_slice %19 {offsets = [0, 80], sizes = [16, 16], strides = [1, 1]} : vector<16x96xf32> to vector<16x16xf32>
    %44 = vector.shape_cast %43 : vector<16x16xf32> to vector<2x8x16xf32>
    "tpu.trace_start"() <{level = 10 : i32, message = "bqd,bkd->bqk"}> : () -> ()
    %cst_20 = arith.constant dense<0.000000e+00> : vector<2x8x8xf32>
    %45 = tpu.matmul %40, %42, %cst_20 {dimension_numbers = #tpu.dot_dimension_numbers<[2], [2], [1], [1], [0, 0, 0, 1, 1, 1], [0], [0]>} : vector<2x8x16xf32>, vector<2x8x16xf32>, vector<2x8x8xf32> -> vector<2x8x8xf32>
    "tpu.trace_stop"() : () -> ()
    %46 = arith.addf %45, %4 : vector<2x8x8xf32>
    %cst_21 = arith.constant dense<0xFF800000> : vector<2x8xf32>
    %47 = vector.multi_reduction <maximumf>, %46, %cst_21 [2] : vector<2x8x8xf32> to vector<2x8xf32>
    %48 = vector.shape_cast %47 : vector<2x8xf32> to vector<2x8x1xf32>
    %49 = vector.broadcast %48 : vector<2x8x1xf32> to vector<2x8x8xf32>
    %50 = arith.subf %46, %49 : vector<2x8x8xf32>
    %51 = math.exp %50 : vector<2x8x8xf32>
    %cst_22 = arith.constant dense<0.000000e+00> : vector<2x8xf32>
    %52 = vector.multi_reduction <add>, %51, %cst_22 [2] : vector<2x8x8xf32> to vector<2x8xf32>
    %53 = vector.shape_cast %52 : vector<2x8xf32> to vector<2x8x1xf32>
    %54 = tpu.reciprocal %53 {approx = true} : vector<2x8x1xf32> -> vector<2x8x1xf32>
    "tpu.trace_start"() <{level = 10 : i32, message = "bqk,bkd->bqd"}> : () -> ()
    %cst_23 = arith.constant dense<0.000000e+00> : vector<2x8x16xf32>
    %55 = tpu.matmul %51, %44, %cst_23 {dimension_numbers = #tpu.dot_dimension_numbers<[2], [1], [1], [2], [0, 0, 0, 1, 1, 2], [0], [0]>} : vector<2x8x8xf32>, vector<2x8x16xf32>, vector<2x8x16xf32> -> vector<2x8x16xf32>
    "tpu.trace_stop"() : () -> ()
    %56 = vector.broadcast %54 : vector<2x8x1xf32> to vector<2x8x16xf32>
    %57 = arith.mulf %55, %56 : vector<2x8x16xf32>
    %58 = tpu.concatenate %38, %57 in 2 : vector<2x8x16xf32>, vector<2x8x16xf32> -> vector<2x8x32xf32>
    %59 = vector.shape_cast %58 : vector<2x8x32xf32> to vector<16x32xf32>
    %cst_24 = arith.constant dense<0.000000e+00> : vector<16x32xf32>
    %60 = tpu.matmul %59, %6, %cst_24 {dimension_numbers = #tpu.dot_dimension_numbers<[1], [0], [0], [1], [0, 0, 1, 1], [], []>} : vector<16x32xf32>, vector<32x32xf32>, vector<16x32xf32> -> vector<16x32xf32>
    %61 = vector.broadcast %10 : vector<1x32xf32> to vector<16x32xf32>
    %62 = arith.addf %60, %61 : vector<16x32xf32>
    %63 = arith.addf %0, %62 : vector<16x32xf32>
    %cst_25 = arith.constant dense<0.000000e+00> : vector<16xf32>
    %64 = vector.multi_reduction <add>, %63, %cst_25 [1] : vector<16x32xf32> to vector<16xf32>
    %65 = vector.shape_cast %64 : vector<16xf32> to vector<16x1xf32>
    %cst_26 = arith.constant 3.200000e+01 : f32
    %66 = vector.broadcast %cst_26 : f32 to vector<16x1xf32>
    %67 = arith.divf %65, %66 : vector<16x1xf32>
    %68 = vector.broadcast %67 : vector<16x1xf32> to vector<16x32xf32>
    %69 = arith.subf %63, %68 : vector<16x32xf32>
    %70 = arith.mulf %69, %69 : vector<16x32xf32>
    %cst_27 = arith.constant dense<0.000000e+00> : vector<16xf32>
    %71 = vector.multi_reduction <add>, %70, %cst_27 [1] : vector<16x32xf32> to vector<16xf32>
    %72 = vector.shape_cast %71 : vector<16xf32> to vector<16x1xf32>
    %cst_28 = arith.constant 3.200000e+01 : f32
    %73 = vector.broadcast %cst_28 : f32 to vector<16x1xf32>
    %74 = arith.divf %72, %73 : vector<16x1xf32>
    %cst_29 = arith.constant 9.99999996E-13 : f32
    %75 = vector.broadcast %cst_29 : f32 to vector<16x1xf32>
    %76 = arith.addf %74, %75 : vector<16x1xf32>
    %77 = math.rsqrt %76 : vector<16x1xf32>
    %78 = vector.broadcast %77 : vector<16x1xf32> to vector<16x32xf32>
    %79 = arith.mulf %69, %78 : vector<16x32xf32>
    %80 = vector.broadcast %13 : vector<1x32xf32> to vector<16x32xf32>
    %81 = arith.mulf %79, %80 : vector<16x32xf32>
    %82 = vector.broadcast %14 : vector<1x32xf32> to vector<16x32xf32>
    %83 = arith.addf %81, %82 : vector<16x32xf32>
    %cst_30 = arith.constant dense<0.000000e+00> : vector<16x64xf32>
    %84 = tpu.matmul %83, %7, %cst_30 {dimension_numbers = #tpu.dot_dimension_numbers<[1], [0], [0], [1], [0, 0, 1, 1], [], []>} : vector<16x32xf32>, vector<32x64xf32>, vector<16x64xf32> -> vector<16x64xf32>
    %85 = vector.broadcast %11 : vector<1x64xf32> to vector<16x64xf32>
    %86 = arith.addf %84, %85 : vector<16x64xf32>
    %cst_31 = arith.constant 5.000000e-01 : f32
    %87 = vector.broadcast %cst_31 : f32 to vector<16x64xf32>
    %88 = arith.mulf %87, %86 : vector<16x64xf32>
    %cst_32 = arith.constant 4.471500e-02 : f32
    %89 = vector.broadcast %cst_32 : f32 to vector<16x64xf32>
    %90 = arith.mulf %89, %86 : vector<16x64xf32>
    %91 = arith.mulf %90, %86 : vector<16x64xf32>
    %92 = arith.mulf %91, %86 : vector<16x64xf32>
    %93 = arith.addf %86, %92 : vector<16x64xf32>
    %cst_33 = arith.constant 0.797884583 : f32
    %94 = vector.broadcast %cst_33 : f32 to vector<16x64xf32>
    %95 = arith.mulf %94, %93 : vector<16x64xf32>
    %96 = math.tanh %95 : vector<16x64xf32>
    %cst_34 = arith.constant 1.000000e+00 : f32
    %97 = vector.broadcast %cst_34 : f32 to vector<16x64xf32>
    %98 = arith.addf %97, %96 : vector<16x64xf32>
    %99 = arith.mulf %88, %98 : vector<16x64xf32>
    %cst_35 = arith.constant dense<0.000000e+00> : vector<16x32xf32>
    %100 = tpu.matmul %99, %8, %cst_35 {dimension_numbers = #tpu.dot_dimension_numbers<[1], [0], [0], [1], [0, 0, 1, 1], [], []>} : vector<16x64xf32>, vector<64x32xf32>, vector<16x32xf32> -> vector<16x32xf32>
    %101 = vector.broadcast %12 : vector<1x32xf32> to vector<16x32xf32>
    %102 = arith.addf %100, %101 : vector<16x32xf32>
    %103 = arith.addf %83, %102 : vector<16x32xf32>
    %cst_36 = arith.constant dense<0.000000e+00> : vector<16xf32>
    %104 = vector.multi_reduction <add>, %103, %cst_36 [1] : vector<16x32xf32> to vector<16xf32>
    %105 = vector.shape_cast %104 : vector<16xf32> to vector<16x1xf32>
    %cst_37 = arith.constant 3.200000e+01 : f32
    %106 = vector.broadcast %cst_37 : f32 to vector<16x1xf32>
    %107 = arith.divf %105, %106 : vector<16x1xf32>
    %108 = vector.broadcast %107 : vector<16x1xf32> to vector<16x32xf32>
    %109 = arith.subf %103, %108 : vector<16x32xf32>
    %110 = arith.mulf %109, %109 : vector<16x32xf32>
    %cst_38 = arith.constant dense<0.000000e+00> : vector<16xf32>
    %111 = vector.multi_reduction <add>, %110, %cst_38 [1] : vector<16x32xf32> to vector<16xf32>
    %112 = vector.shape_cast %111 : vector<16xf32> to vector<16x1xf32>
    %cst_39 = arith.constant 3.200000e+01 : f32
    %113 = vector.broadcast %cst_39 : f32 to vector<16x1xf32>
    %114 = arith.divf %112, %113 : vector<16x1xf32>
    %cst_40 = arith.constant 9.99999996E-13 : f32
    %115 = vector.broadcast %cst_40 : f32 to vector<16x1xf32>
    %116 = arith.addf %114, %115 : vector<16x1xf32>
    %117 = math.rsqrt %116 : vector<16x1xf32>
    %118 = vector.broadcast %117 : vector<16x1xf32> to vector<16x32xf32>
    %119 = arith.mulf %109, %118 : vector<16x32xf32>
    %120 = vector.broadcast %15 : vector<1x32xf32> to vector<16x32xf32>
    %121 = arith.mulf %119, %120 : vector<16x32xf32>
    %122 = vector.broadcast %16 : vector<1x32xf32> to vector<16x32xf32>
    %123 = arith.addf %121, %122 : vector<16x32xf32>
    %c168 = arith.constant 168 : index
    %c0_41 = arith.constant 0 : index
    %124 = vector.load %arg2[%c168, %c0_41] : memref<376x128xf32, #tpu.memory_space<vmem>>, vector<32x96xf32>
    %c200 = arith.constant 200 : index
    %c0_42 = arith.constant 0 : index
    %125 = vector.load %arg2[%c200, %c0_42] : memref<376x128xf32, #tpu.memory_space<vmem>>, vector<32x32xf32>
    %c232 = arith.constant 232 : index
    %c0_43 = arith.constant 0 : index
    %126 = vector.load %arg2[%c232, %c0_43] : memref<376x128xf32, #tpu.memory_space<vmem>>, vector<32x64xf32>
    %c264 = arith.constant 264 : index
    %c0_44 = arith.constant 0 : index
    %127 = vector.load %arg2[%c264, %c0_44] : memref<376x128xf32, #tpu.memory_space<vmem>>, vector<64x32xf32>
    %c328 = arith.constant 328 : index
    %c0_45 = arith.constant 0 : index
    %128 = vector.load %arg2[%c328, %c0_45] : memref<376x128xf32, #tpu.memory_space<vmem>>, vector<1x96xf32>
    %c329 = arith.constant 329 : index
    %c0_46 = arith.constant 0 : index
    %129 = vector.load %arg2[%c329, %c0_46] : memref<376x128xf32, #tpu.memory_space<vmem>>, vector<1x32xf32>
    %c330 = arith.constant 330 : index
    %c0_47 = arith.constant 0 : index
    %130 = vector.load %arg2[%c330, %c0_47] : memref<376x128xf32, #tpu.memory_space<vmem>>, vector<1x64xf32>
    %c331 = arith.constant 331 : index
    %c0_48 = arith.constant 0 : index
    %131 = vector.load %arg2[%c331, %c0_48] : memref<376x128xf32, #tpu.memory_space<vmem>>, vector<1x32xf32>
    %c332 = arith.constant 332 : index
    %c0_49 = arith.constant 0 : index
    %132 = vector.load %arg2[%c332, %c0_49] : memref<376x128xf32, #tpu.memory_space<vmem>>, vector<1x32xf32>
    %c333 = arith.constant 333 : index
    %c0_50 = arith.constant 0 : index
    %133 = vector.load %arg2[%c333, %c0_50] : memref<376x128xf32, #tpu.memory_space<vmem>>, vector<1x32xf32>
    %c334 = arith.constant 334 : index
    %c0_51 = arith.constant 0 : index
    %134 = vector.load %arg2[%c334, %c0_51] : memref<376x128xf32, #tpu.memory_space<vmem>>, vector<1x32xf32>
    %c335 = arith.constant 335 : index
    %c0_52 = arith.constant 0 : index
    %135 = vector.load %arg2[%c335, %c0_52] : memref<376x128xf32, #tpu.memory_space<vmem>>, vector<1x32xf32>
    %cst_53 = arith.constant dense<0.000000e+00> : vector<16x96xf32>
    %136 = tpu.matmul %123, %124, %cst_53 {dimension_numbers = #tpu.dot_dimension_numbers<[1], [0], [0], [1], [0, 0, 1, 1], [], []>} : vector<16x32xf32>, vector<32x96xf32>, vector<16x96xf32> -> vector<16x96xf32>
    %137 = vector.broadcast %128 : vector<1x96xf32> to vector<16x96xf32>
    %138 = arith.addf %136, %137 : vector<16x96xf32>
    %139 = vector.extract_strided_slice %138 {offsets = [0, 0], sizes = [16, 16], strides = [1, 1]} : vector<16x96xf32> to vector<16x16xf32>
    %140 = vector.shape_cast %139 : vector<16x16xf32> to vector<2x8x16xf32>
    %141 = vector.extract_strided_slice %138 {offsets = [0, 32], sizes = [16, 16], strides = [1, 1]} : vector<16x96xf32> to vector<16x16xf32>
    %142 = vector.shape_cast %141 : vector<16x16xf32> to vector<2x8x16xf32>
    %143 = vector.extract_strided_slice %138 {offsets = [0, 64], sizes = [16, 16], strides = [1, 1]} : vector<16x96xf32> to vector<16x16xf32>
    %144 = vector.shape_cast %143 : vector<16x16xf32> to vector<2x8x16xf32>
    "tpu.trace_start"() <{level = 10 : i32, message = "bqd,bkd->bqk"}> : () -> ()
    %cst_54 = arith.constant dense<0.000000e+00> : vector<2x8x8xf32>
    %145 = tpu.matmul %140, %142, %cst_54 {dimension_numbers = #tpu.dot_dimension_numbers<[2], [2], [1], [1], [0, 0, 0, 1, 1, 1], [0], [0]>} : vector<2x8x16xf32>, vector<2x8x16xf32>, vector<2x8x8xf32> -> vector<2x8x8xf32>
    "tpu.trace_stop"() : () -> ()
    %146 = arith.addf %145, %4 : vector<2x8x8xf32>
    %cst_55 = arith.constant dense<0xFF800000> : vector<2x8xf32>
    %147 = vector.multi_reduction <maximumf>, %146, %cst_55 [2] : vector<2x8x8xf32> to vector<2x8xf32>
    %148 = vector.shape_cast %147 : vector<2x8xf32> to vector<2x8x1xf32>
    %149 = vector.broadcast %148 : vector<2x8x1xf32> to vector<2x8x8xf32>
    %150 = arith.subf %146, %149 : vector<2x8x8xf32>
    %151 = math.exp %150 : vector<2x8x8xf32>
    %cst_56 = arith.constant dense<0.000000e+00> : vector<2x8xf32>
    %152 = vector.multi_reduction <add>, %151, %cst_56 [2] : vector<2x8x8xf32> to vector<2x8xf32>
    %153 = vector.shape_cast %152 : vector<2x8xf32> to vector<2x8x1xf32>
    %154 = tpu.reciprocal %153 {approx = true} : vector<2x8x1xf32> -> vector<2x8x1xf32>
    "tpu.trace_start"() <{level = 10 : i32, message = "bqk,bkd->bqd"}> : () -> ()
    %cst_57 = arith.constant dense<0.000000e+00> : vector<2x8x16xf32>
    %155 = tpu.matmul %151, %144, %cst_57 {dimension_numbers = #tpu.dot_dimension_numbers<[2], [1], [1], [2], [0, 0, 0, 1, 1, 2], [0], [0]>} : vector<2x8x8xf32>, vector<2x8x16xf32>, vector<2x8x16xf32> -> vector<2x8x16xf32>
    "tpu.trace_stop"() : () -> ()
    %156 = vector.broadcast %154 : vector<2x8x1xf32> to vector<2x8x16xf32>
    %157 = arith.mulf %155, %156 : vector<2x8x16xf32>
    %158 = vector.extract_strided_slice %138 {offsets = [0, 16], sizes = [16, 16], strides = [1, 1]} : vector<16x96xf32> to vector<16x16xf32>
    %159 = vector.shape_cast %158 : vector<16x16xf32> to vector<2x8x16xf32>
    %160 = vector.extract_strided_slice %138 {offsets = [0, 48], sizes = [16, 16], strides = [1, 1]} : vector<16x96xf32> to vector<16x16xf32>
    %161 = vector.shape_cast %160 : vector<16x16xf32> to vector<2x8x16xf32>
    %162 = vector.extract_strided_slice %138 {offsets = [0, 80], sizes = [16, 16], strides = [1, 1]} : vector<16x96xf32> to vector<16x16xf32>
    %163 = vector.shape_cast %162 : vector<16x16xf32> to vector<2x8x16xf32>
    "tpu.trace_start"() <{level = 10 : i32, message = "bqd,bkd->bqk"}> : () -> ()
    %cst_58 = arith.constant dense<0.000000e+00> : vector<2x8x8xf32>
    %164 = tpu.matmul %159, %161, %cst_58 {dimension_numbers = #tpu.dot_dimension_numbers<[2], [2], [1], [1], [0, 0, 0, 1, 1, 1], [0], [0]>} : vector<2x8x16xf32>, vector<2x8x16xf32>, vector<2x8x8xf32> -> vector<2x8x8xf32>
    "tpu.trace_stop"() : () -> ()
    %165 = arith.addf %164, %4 : vector<2x8x8xf32>
    %cst_59 = arith.constant dense<0xFF800000> : vector<2x8xf32>
    %166 = vector.multi_reduction <maximumf>, %165, %cst_59 [2] : vector<2x8x8xf32> to vector<2x8xf32>
    %167 = vector.shape_cast %166 : vector<2x8xf32> to vector<2x8x1xf32>
    %168 = vector.broadcast %167 : vector<2x8x1xf32> to vector<2x8x8xf32>
    %169 = arith.subf %165, %168 : vector<2x8x8xf32>
    %170 = math.exp %169 : vector<2x8x8xf32>
    %cst_60 = arith.constant dense<0.000000e+00> : vector<2x8xf32>
    %171 = vector.multi_reduction <add>, %170, %cst_60 [2] : vector<2x8x8xf32> to vector<2x8xf32>
    %172 = vector.shape_cast %171 : vector<2x8xf32> to vector<2x8x1xf32>
    %173 = tpu.reciprocal %172 {approx = true} : vector<2x8x1xf32> -> vector<2x8x1xf32>
    "tpu.trace_start"() <{level = 10 : i32, message = "bqk,bkd->bqd"}> : () -> ()
    %cst_61 = arith.constant dense<0.000000e+00> : vector<2x8x16xf32>
    %174 = tpu.matmul %170, %163, %cst_61 {dimension_numbers = #tpu.dot_dimension_numbers<[2], [1], [1], [2], [0, 0, 0, 1, 1, 2], [0], [0]>} : vector<2x8x8xf32>, vector<2x8x16xf32>, vector<2x8x16xf32> -> vector<2x8x16xf32>
    "tpu.trace_stop"() : () -> ()
    %175 = vector.broadcast %173 : vector<2x8x1xf32> to vector<2x8x16xf32>
    %176 = arith.mulf %174, %175 : vector<2x8x16xf32>
    %177 = tpu.concatenate %157, %176 in 2 : vector<2x8x16xf32>, vector<2x8x16xf32> -> vector<2x8x32xf32>
    %178 = vector.shape_cast %177 : vector<2x8x32xf32> to vector<16x32xf32>
    %cst_62 = arith.constant dense<0.000000e+00> : vector<16x32xf32>
    %179 = tpu.matmul %178, %125, %cst_62 {dimension_numbers = #tpu.dot_dimension_numbers<[1], [0], [0], [1], [0, 0, 1, 1], [], []>} : vector<16x32xf32>, vector<32x32xf32>, vector<16x32xf32> -> vector<16x32xf32>
    %180 = vector.broadcast %129 : vector<1x32xf32> to vector<16x32xf32>
    %181 = arith.addf %179, %180 : vector<16x32xf32>
    %182 = arith.addf %123, %181 : vector<16x32xf32>
    %cst_63 = arith.constant dense<0.000000e+00> : vector<16xf32>
    %183 = vector.multi_reduction <add>, %182, %cst_63 [1] : vector<16x32xf32> to vector<16xf32>
    %184 = vector.shape_cast %183 : vector<16xf32> to vector<16x1xf32>
    %cst_64 = arith.constant 3.200000e+01 : f32
    %185 = vector.broadcast %cst_64 : f32 to vector<16x1xf32>
    %186 = arith.divf %184, %185 : vector<16x1xf32>
    %187 = vector.broadcast %186 : vector<16x1xf32> to vector<16x32xf32>
    %188 = arith.subf %182, %187 : vector<16x32xf32>
    %189 = arith.mulf %188, %188 : vector<16x32xf32>
    %cst_65 = arith.constant dense<0.000000e+00> : vector<16xf32>
    %190 = vector.multi_reduction <add>, %189, %cst_65 [1] : vector<16x32xf32> to vector<16xf32>
    %191 = vector.shape_cast %190 : vector<16xf32> to vector<16x1xf32>
    %cst_66 = arith.constant 3.200000e+01 : f32
    %192 = vector.broadcast %cst_66 : f32 to vector<16x1xf32>
    %193 = arith.divf %191, %192 : vector<16x1xf32>
    %cst_67 = arith.constant 9.99999996E-13 : f32
    %194 = vector.broadcast %cst_67 : f32 to vector<16x1xf32>
    %195 = arith.addf %193, %194 : vector<16x1xf32>
    %196 = math.rsqrt %195 : vector<16x1xf32>
    %197 = vector.broadcast %196 : vector<16x1xf32> to vector<16x32xf32>
    %198 = arith.mulf %188, %197 : vector<16x32xf32>
    %199 = vector.broadcast %132 : vector<1x32xf32> to vector<16x32xf32>
    %200 = arith.mulf %198, %199 : vector<16x32xf32>
    %201 = vector.broadcast %133 : vector<1x32xf32> to vector<16x32xf32>
    %202 = arith.addf %200, %201 : vector<16x32xf32>
    %cst_68 = arith.constant dense<0.000000e+00> : vector<16x64xf32>
    %203 = tpu.matmul %202, %126, %cst_68 {dimension_numbers = #tpu.dot_dimension_numbers<[1], [0], [0], [1], [0, 0, 1, 1], [], []>} : vector<16x32xf32>, vector<32x64xf32>, vector<16x64xf32> -> vector<16x64xf32>
    %204 = vector.broadcast %130 : vector<1x64xf32> to vector<16x64xf32>
    %205 = arith.addf %203, %204 : vector<16x64xf32>
    %cst_69 = arith.constant 5.000000e-01 : f32
    %206 = vector.broadcast %cst_69 : f32 to vector<16x64xf32>
    %207 = arith.mulf %206, %205 : vector<16x64xf32>
    %cst_70 = arith.constant 4.471500e-02 : f32
    %208 = vector.broadcast %cst_70 : f32 to vector<16x64xf32>
    %209 = arith.mulf %208, %205 : vector<16x64xf32>
    %210 = arith.mulf %209, %205 : vector<16x64xf32>
    %211 = arith.mulf %210, %205 : vector<16x64xf32>
    %212 = arith.addf %205, %211 : vector<16x64xf32>
    %cst_71 = arith.constant 0.797884583 : f32
    %213 = vector.broadcast %cst_71 : f32 to vector<16x64xf32>
    %214 = arith.mulf %213, %212 : vector<16x64xf32>
    %215 = math.tanh %214 : vector<16x64xf32>
    %cst_72 = arith.constant 1.000000e+00 : f32
    %216 = vector.broadcast %cst_72 : f32 to vector<16x64xf32>
    %217 = arith.addf %216, %215 : vector<16x64xf32>
    %218 = arith.mulf %207, %217 : vector<16x64xf32>
    %cst_73 = arith.constant dense<0.000000e+00> : vector<16x32xf32>
    %219 = tpu.matmul %218, %127, %cst_73 {dimension_numbers = #tpu.dot_dimension_numbers<[1], [0], [0], [1], [0, 0, 1, 1], [], []>} : vector<16x64xf32>, vector<64x32xf32>, vector<16x32xf32> -> vector<16x32xf32>
    %220 = vector.broadcast %131 : vector<1x32xf32> to vector<16x32xf32>
    %221 = arith.addf %219, %220 : vector<16x32xf32>
    %222 = arith.addf %202, %221 : vector<16x32xf32>
    %cst_74 = arith.constant dense<0.000000e+00> : vector<16xf32>
    %223 = vector.multi_reduction <add>, %222, %cst_74 [1] : vector<16x32xf32> to vector<16xf32>
    %224 = vector.shape_cast %223 : vector<16xf32> to vector<16x1xf32>
    %cst_75 = arith.constant 3.200000e+01 : f32
    %225 = vector.broadcast %cst_75 : f32 to vector<16x1xf32>
    %226 = arith.divf %224, %225 : vector<16x1xf32>
    %227 = vector.broadcast %226 : vector<16x1xf32> to vector<16x32xf32>
    %228 = arith.subf %222, %227 : vector<16x32xf32>
    %229 = arith.mulf %228, %228 : vector<16x32xf32>
    %cst_76 = arith.constant dense<0.000000e+00> : vector<16xf32>
    %230 = vector.multi_reduction <add>, %229, %cst_76 [1] : vector<16x32xf32> to vector<16xf32>
    %231 = vector.shape_cast %230 : vector<16xf32> to vector<16x1xf32>
    %cst_77 = arith.constant 3.200000e+01 : f32
    %232 = vector.broadcast %cst_77 : f32 to vector<16x1xf32>
    %233 = arith.divf %231, %232 : vector<16x1xf32>
    %cst_78 = arith.constant 9.99999996E-13 : f32
    %234 = vector.broadcast %cst_78 : f32 to vector<16x1xf32>
    %235 = arith.addf %233, %234 : vector<16x1xf32>
    %236 = math.rsqrt %235 : vector<16x1xf32>
    %237 = vector.broadcast %236 : vector<16x1xf32> to vector<16x32xf32>
    %238 = arith.mulf %228, %237 : vector<16x32xf32>
    %239 = vector.broadcast %134 : vector<1x32xf32> to vector<16x32xf32>
    %240 = arith.mulf %238, %239 : vector<16x32xf32>
    %241 = vector.broadcast %135 : vector<1x32xf32> to vector<16x32xf32>
    %242 = arith.addf %240, %241 : vector<16x32xf32>
    %243 = vector.shape_cast %242 : vector<16x32xf32> to vector<2x8x32xf32>
    %244 = vector.extract_strided_slice %243 {offsets = [0, 0, 0], sizes = [2, 1, 32], strides = [1, 1, 1]} : vector<2x8x32xf32> to vector<2x1x32xf32>
    %245 = vector.shape_cast %244 : vector<2x1x32xf32> to vector<2x32xf32>
    %c336 = arith.constant 336 : index
    %c0_79 = arith.constant 0 : index
    %246 = vector.load %arg2[%c336, %c0_79] : memref<376x128xf32, #tpu.memory_space<vmem>>, vector<32x128xf32>
    %c368 = arith.constant 368 : index
    %c0_80 = arith.constant 0 : index
    %247 = vector.load %arg2[%c368, %c0_80] : memref<376x128xf32, #tpu.memory_space<vmem>>, vector<1x128xf32>
    %cst_81 = arith.constant dense<0.000000e+00> : vector<2x128xf32>
    %248 = tpu.matmul %245, %246, %cst_81 {dimension_numbers = #tpu.dot_dimension_numbers<[1], [0], [0], [1], [0, 0, 1, 1], [], []>} : vector<2x32xf32>, vector<32x128xf32>, vector<2x128xf32> -> vector<2x128xf32>
    %249 = vector.broadcast %247 : vector<1x128xf32> to vector<2x128xf32>
    %250 = arith.addf %248, %249 : vector<2x128xf32>
    %c0_82 = arith.constant 0 : index
    %c0_83 = arith.constant 0 : index
    %251 = vector.load %arg3[%c0_82, %c0_83] : memref<2x128xf32, #tpu.memory_space<vmem>>, vector<2x128xf32>
    tpu.vector_store %arg3[%c0_82, %c0_83], %250 {strides = array<i32>} : memref<2x128xf32, #tpu.memory_space<vmem>>, vector<2x128xf32>,
    return
  }
}

</mosaic_0001>

<bundles_post_ra>
// kernel: forward_pallas.1
= control target key start
LH: loop header
LB: loop body
LE: loop exit
PB: predicated region body
PF: predicated region fallthrough
CT: control target
= control target key end

     0   :  { %vm83_vm0 = vcmask 261120   ;;  %s3393_s0 = inlined_call_operand.vmem [shape: f32[16,32], index: 0, kind: input, shape index: {}]   ;;  %s3394_s1 = inlined_call_operand.vmem [shape: f32[2,8], index: 1, kind: input, shape index: {}]   ;;  %s3395_s2 = inlined_call_operand.vmem [shape: f32[376,128], index: 2, kind: input, shape index: {}]   ;;  %s3396_s3 = inlined_call_operand.hbm [shape: f32[2,128], index: 3, kind: output, shape index: {}]  }
   0x1   :  { %v51_v0 = vld [vmem:[%s3395_s2] sm:$0xff]  ;;  %v52_v1 = vld [vmem:[%s3395_s2 + $0x8] sm:$0xff]  ;;  %v53_v2 = vld [vmem:[%s3395_s2 + $0x10] sm:$0xff] }
   0x2   :  { %v2772_v3 = vpack.c.bf16 %v52_v1, %v51_v0  ;;  %v54_v4 = vld [vmem:[%s3395_s2 + $0x18] sm:$0xff]  ;;  %v2995_v5 = vld [vmem:[%s3393_s0] sm:$0xff] }
   0x3   :  { %v2776_v6 = vpack.c.bf16 %v54_v4, %v53_v2  ;;  %2585 = vmatprep.mubr.msk.f32.mxu0 %vm83_vm0, %v2995_v5 }
   0x4   :  { %8 = vsyncpa [#allocation3], 0  ;;  %2773 = vmatprep.subr.bf16.mxu0 %v2772_v3  ;;  %v3002_v7 = vld [vmem:[%s3393_s0 + $0x8] sm:$0xff]  ;;  %v2949_v8 = vmov 0.0   ;;  %vm2950_vm1 = vmmov 0   ;;  %s2951_s0 = smov 96   ;;  %v30_v22 = vlaneseq }
   0x5   :  { %2775 = vmatpush3.bf16.msra.mxu0 %v2772_v3  ;;  %2588 = vmatprep.subr.mxu1 %v2949_v8  ;;  %v2426_v9 = vld [vmem:[%s3395_s2 + $0xa0] ss:$0 sm:$0xff]  ;;  %s2952_s26 = smov 64   ;;  %s2953_s27 = smov 80   ;;  %vm168_vm2 = vcmask 130048   ;;  %vm320_vm3 = vcmask 64512  }
   0x6   :  { %2777 = vmatprep.subr.bf16.mxu0 %v2776_v6  ;;  %2590 = vmatprep.mubr.msk.f32.mxu1 %vm2950_vm1, %v2949_v8  ;;  %s2954_s28 = smov 112   ;;  %v2955_v20 = vmov 1966171168   ;;  %v31_v24 = vshrl.u32 %v30_v22, 7  ;;  %s2957_s12 = smov 16   ;;  %vm1068_vm4 = vcmask 523264  }
   0x7   :  { %v28_v21 = vunpack.c.l.s4 %v2955_v20  ;;  %v2425_v26 = vld.sshfl [vmem:[%s3394_s1] sm:$0x11 pattern:$0x75316420]  ;;  %s2956_s1 = smov 48   ;;  %v57_v20 = vld [vmem:[%s3395_s2 + $0x30] sm:$0xff] }
   0x8   :  { %v43_v28 = vsub.s32 0, %v31_v24  ;;  %v26_v29 = vcombine.high %v2425_v26, %v2425_v26  ;;  %vm2336_vm5 = vcmask 1041409   ;;  %s2959_s13 = smov [#allocation2]  }
   0x9   :  { %2779 = vmatpush3.bf16.msra.mxu0 %v2776_v6  ;;  %v29_v23 = vunpack.c.0.s8 %v28_v21  ;;  %v58_v21 = vld [vmem:[%s3395_s2 + $0x38] sm:$0xff]  ;;  %s2417_s14 = sshll.u32 %s2959_s13, 4  ;;  %s2418_s14 = int_to_ptr.vmem [resolvable:$true] %s2417_s14 }
   0xa   :  { %2608 = vmatprep.subr.mxu0 %v2949_v8  ;;  %v2784_v22 = vpack.c.bf16 %v58_v21, %v57_v20  ;;  %p2930_p1 = scmp.lt.s32.totalorder %s2418_s14, %s2418_s14 }
   0xb   :  { %v32_v25 = vsub.s32 %v29_v23, %v31_v24 }
   0xc   :  { %2586 = vmatmul.mubr.msk.f32.vlgmr.msra.gmra.mrb[0].mxu0 %vm83_vm0, %v3002_v7 }
   0xd   :  { %2610 = vmatprep.mubr.msk.f32.mxu0 %vm2950_vm1, %v2949_v8  ;;  %v33_v27 = vrot.slane %v2425_v26, %v32_v25  ;;  %v40_v31 = vrot.slane %v26_v29, %v32_v25 }
   0xf   :  { %v3048_v30 = vrot.slane %v33_v27, %v43_v28  ;;  %v3051_v35 = vrot.slane %v40_v31, %v43_v28 }
  0xdf   :  { %v2587_v10 = vpop.f32.mrb[0].mxu0 }
  0xe0   :  { %v156_v11 = vpop.f32.mrb[1].mxu0  ;;  %v162_v13 = vadd.f32 %v2587_v10, %v2426_v9 }
  0xe1   :  { %v3015_v12 = vadd.f32 %v2426_v9, %v156_v11 }
  0xe3   :  { %166 = vrot.lane.b32.xlu0 %v3015_v12, %s2951_s0 }
  0xe7   :  { %244 = vrot.lane.b32.xlu0 %v162_v13, %s2951_s0 }
  0xeb   :  { %341 = vrot.lane.b32.xlu0 %v3015_v12, %s2952_s26 }
  0xef   :  { %497 = vrot.lane.b32.xlu0 %v3015_v12, %s2953_s27 }
  0xf3   :  { %575 = vrot.lane.b32.xlu0 %v162_v13, %s2953_s27 }
  0xf7   :  { %495 = vrot.lane.b32.xlu0 %v3015_v12, %s2954_s28 }
  0xfb   :  { %573 = vrot.lane.b32.xlu0 %v162_v13, %s2954_s28 }
 0x155   :  { %v167_v14 = vpop.permute.xlu0 %166 }
 0x156   :  { %2589 = vmatpush3.xpose.msk.msra.mxu1 %vm168_vm2, %v167_v14 }
 0x157   :  { %2593 = vmatprep.subr.mxu1 %v2949_v8 }
 0x159   :  { %2591 = vmatmul.mubr.msk.f32.vlgmr.msra.gmra.mrb[0].mxu1 %vm168_vm2, %v3015_v12  ;;  %v245_v15 = vpop.permute.xlu0 %244 }
 0x15a   :  { %2594 = vmatpush3.xpose.msk.msra.mxu1 %vm168_vm2, %v245_v15  ;;  %2595 = vmatprep.mubr.msk.f32.mxu1 %vm2950_vm1, %v2949_v8 }
 0x15b   :  { %2598 = vmatprep.subr.mxu1 %v2949_v8 }
 0x15d   :  { %2596 = vmatmul.mubr.msk.f32.vlgmr.msra.gmra.mrb[2].mxu1 %vm168_vm2, %v162_v13  ;;  %v342_v16 = vpop.permute.xlu0 %341 }
 0x15e   :  { %2599 = vmatpush3.msra.mxu1 %v342_v16  ;;  %2600 = vmatprep.mubr.msk.f32.mxu1 %vm2950_vm1, %v2949_v8 }
 0x15f   :  { %2603 = vmatprep.subr.mxu1 %v2949_v8 }
 0x161   :  { %v498_v17 = vpop.permute.xlu0 %497 }
 0x162   :  { %2609 = vmatpush3.xpose.msk.msra.mxu0 %vm168_vm2, %v498_v17 }
 0x163   :  { %2618 = vmatprep.subr.mxu0 %v2949_v8 }
 0x165   :  { %v576_v18 = vpop.permute.xlu0 %575 }
 0x169   :  { %v496_v19 = vpop.permute.xlu0 %495 }
 0x16a   :  { %2611 = vmatmul.mubr.msk.f32.vlgmr.msra.gmra.mrb[2].mxu0 %vm168_vm2, %v496_v19 }
 0x16b   :  { %2620 = vmatprep.mubr.msk.f32.mxu0 %vm2950_vm1, %v2949_v8 }
 0x16d   :  { %v574_v54 = vpop.permute.xlu0 %573 }
 0x22c   :  { %v239_v32 = vpop.f32.mrb[0].mxu1 }
 0x22d   :  { %v240_v33 = vadd.f32 %v239_v32, %v3048_v30  ;;  %v2592_v34 = vpop.f32.mrb[1].mxu1 }
 0x22f   :  { %v321_v36 = vsel %vm320_vm3, %v240_v33, -inf }
 0x230   :  { %322 = vmax.xlane.f32.xlu1 %v321_v36  ;;  %v316_v37 = vpop.f32.mrb[2].mxu1 }
 0x231   :  { %v317_v38 = vadd.f32 %v316_v37, %v3051_v35  ;;  %v2597_v39 = vpop.f32.mrb[3].mxu1 }
 0x233   :  { %v324_v40 = vsel %vm320_vm3, %v317_v38, -inf }
 0x234   :  { %325 = vmax.xlane.f32.xlu1 %v324_v40 }
 0x23d   :  { %v569_v41 = vpop.f32.mrb[2].mxu0 }
 0x23e   :  { %v2612_v42 = vpop.f32.mrb[3].mxu0  ;;  %v570_v43 = vadd.f32 %v569_v41, %v3048_v30 }
 0x240   :  { %v651_v44 = vsel %vm320_vm3, %v570_v43, -inf }
 0x245   :  { %417 = vrot.lane.b32.xlu1 %v162_v13, %s2952_s26 }
 0x269   :  { %652 = vmax.xlane.f32.xlu1 %v651_v44  ;;  %v2441_v44 = vld [vmem:[%s3395_s2 + $0xa1] ss:$0 sm:$0xff] }
 0x27a   :  { %747 = vrot.lane.b32.xlu1 %v162_v13, %s2956_s1 }
 0x2bd   :  { %v323_v45 = vpop.xlane.xlu1 %322 }
 0x2be   :  { %v327_v46 = vsub.f32 %v240_v33, %v323_v45 }
 0x2c0   :  { %v329_v47 = vmul.f32 1.442695, %v327_v46 }
 0x2c1   :  { %v326_v48 = vpop.xlane.xlu1 %325 }
 0x2c2   :  { %2869 = vpow2.f32 %v329_v47  ;;  %v328_v49 = vsub.f32 %v317_v38, %v326_v48 }
 0x2c4   :  { %v331_v50 = vmul.f32 1.442695, %v328_v49 }
 0x2c5   :  { %v418_v52 = vpop.permute.xlu1 %417 }
 0x2c6   :  { %2871 = vpow2.f32 %v331_v50 }
 0x2cc   :  { %v2870_v51 = vpop.eup %2869 }
 0x2cd   :  { %2601 = vmatmul.mubr.msk.f32.vlgmr.msra.gmra.mrb[4].mxu1 %vm320_vm3, %v2870_v51  ;;  %v333_v16 = vsel %vm320_vm3, %v2870_v51, 0.0 }
 0x2ce   :  { %2604 = vmatpush3.msra.mxu1 %v418_v52  ;;  %2605 = vmatprep.mubr.msk.f32.mxu1 %vm2950_vm1, %v2949_v8 }
 0x2cf   :  { %2613 = vmatprep.subr.mxu1 %v2949_v8 }
 0x2d0   :  { %v2872_v53 = vpop.eup %2871 }
 0x2d1   :  { %2606 = vmatmul.mubr.msk.f32.vlgmr.msra.gmra.mrb[6].mxu1 %vm320_vm3, %v2872_v53  ;;  %v336_v61 = vsel %vm320_vm3, %v2872_v53, 0.0 }
 0x2d2   :  { %2615 = vmatprep.mubr.msk.f32.mxu1 %vm2950_vm1, %v2949_v8 }
 0x2d5   :  { %2614 = vmatpush3.xpose.msk.msra.mxu1 %vm168_vm2, %v576_v18  ;;  %v56_v18 = vld [vmem:[%s3395_s2 + $0x28] sm:$0xff] }
 0x2d6   :  { %2623 = vmatprep.subr.mxu1 %v2949_v8 }
 0x2d8   :  { %2616 = vmatmul.mubr.msk.f32.vlgmr.msra.gmra.mrb[8].mxu1 %vm168_vm2, %v574_v54 }
 0x2d9   :  { %2625 = vmatprep.mubr.msk.f32.mxu1 %vm2950_vm1, %v2949_v8 }
 0x2f6   :  { %v653_v55 = vpop.xlane.xlu1 %652 }
 0x2f7   :  { %v657_v56 = vsub.f32 %v570_v43, %v653_v55 }
 0x2f9   :  { %v659_v57 = vmul.f32 1.442695, %v657_v56 }
 0x2fa   :  { %v748_v58 = vpop.permute.xlu1 %747 }
 0x2fb   :  { %2873 = vpow2.f32 %v659_v57  ;;  %2624 = vmatpush3.msra.mxu1 %v748_v58 }
 0x305   :  { %v2874_v59 = vpop.eup %2873 }
 0x306   :  { %v663_v60 = vsel %vm320_vm3, %v2874_v59, 0.0 }
 0x307   :  { %664 = vadd.xlane.f32.xlu1 %v663_v60 }
 0x30b   :  { %337 = vadd.xlane.f32.xlu1 %v336_v61 }
 0x394   :  { %v665_v17 = vpop.xlane.xlu1 %664 }
 0x398   :  { %v338_v34 = vpop.xlane.xlu1 %337 }
 0x3a0   :  { %v413_v62 = vpop.f32.mrb[4].mxu1 }
 0x3a1   :  { %v2602_v63 = vpop.f32.mrb[5].mxu1 }
 0x3a4   :  { %v489_v0 = vpop.f32.mrb[6].mxu1 }
 0x3a5   :  { %v2607_v1 = vpop.f32.mrb[7].mxu1 }
 0x3a6   :  { %v62_v1 = vld [vmem:[%s3395_s2 + $0x58] sm:$0xff] }
 0x3ab   :  { %v647_v2 = vpop.f32.mrb[8].mxu1 }
 0x3ac   :  { %v648_v3 = vadd.f32 %v647_v2, %v3051_v35  ;;  %v2617_v4 = vpop.f32.mrb[9].mxu1 }
 0x3ae   :  { %v654_v6 = vsel %vm320_vm3, %v648_v3, -inf }
 0x3af   :  { %655 = vmax.xlane.f32.xlu0 %v654_v6 }
 0x3c5   :  { %671 = vrot.lane.b32.xlu0 %v3015_v12, %s2956_s1  ;;  %v55_v12 = vld [vmem:[%s3395_s2 + $0x20] sm:$0xff] }
 0x3c6   :  { %v2780_v19 = vpack.c.bf16 %v56_v18, %v55_v12  ;;  %v2445_v12 = vld [vmem:[%s3395_s2 + $0xa5] ss:$0 sm:$0xff] }
 0x43c   :  { %v656_v9 = vpop.xlane.xlu0 %655 }
 0x43d   :  { %v658_v10 = vsub.f32 %v648_v3, %v656_v9 }
 0x43f   :  { %v661_v11 = vmul.f32 1.442695, %v658_v10 }
 0x440   :  { %v672_v13 = vpop.permute.xlu0 %671 }
 0x441   :  { %2875 = vpow2.f32 %v661_v11  ;;  %2619 = vmatpush3.msra.mxu0 %v672_v13 }
 0x442   :  { %2621 = vmatmul.mubr.msk.f32.vlgmr.msra.gmra.mrb[4].mxu0 %vm320_vm3, %v2874_v59  ;;  %2877 = vrcp.f32 %v665_v17  ;;  %2781 = vmatprep.subr.bf16.mxu0 %v2780_v19 }
 0x443   :  { %2783 = vmatpush3.bf16.msra.mxu0 %v2780_v19 }
 0x444   :  { %2785 = vmatprep.subr.bf16.mxu0 %v2784_v22 }
 0x447   :  { %2787 = vmatpush3.bf16.msra.mxu0 %v2784_v22  ;;  %v63_v22 = vld [vmem:[%s3395_s2 + $0x60] sm:$0xff] }
 0x44b   :  { %v2876_v14 = vpop.eup %2875 }
 0x44c   :  { %2626 = vmatmul.mubr.msk.f32.vlgmr.msra.gmra.mrb[10].mxu1 %vm320_vm3, %v2876_v14  ;;  %v666_v15 = vsel %vm320_vm3, %v2876_v14, 0.0  ;;  %v2878_v24 = vpop.eup %2877  ;;  %v2444_v14 = vld [vmem:[%s3395_s2 + $0xa4] ss:$0 sm:$0xff] }
 0x44d   :  { %667 = vadd.xlane.f32.xlu0 %v666_v15 }
 0x451   :  { %334 = vadd.xlane.f32.xlu0 %v333_v16 }
 0x4da   :  { %v668_v23 = vpop.xlane.xlu0 %667 }
 0x4db   :  { %2879 = vrcp.f32 %v668_v23  ;;  %v64_v23 = vld [vmem:[%s3395_s2 + $0x68] sm:$0xff] }
 0x4de   :  { %v335_v33 = vpop.xlane.xlu0 %334 }
 0x4df   :  { %2881 = vrcp.f32 %v335_v33  ;;  %v70_v33 = vld [vmem:[%s3395_s2 + $0x98] sm:$0xff] }
 0x4e0   :  { %2883 = vrcp.f32 %v338_v34 }
 0x4e5   :  { %v2880_v28 = vpop.eup %2879 }
 0x4e9   :  { %v2882_v36 = vpop.eup %2881 }
 0x4ea   :  { %v493_v37 = vmul.f32 %v2882_v36, %v413_v62  ;;  %v2884_v40 = vpop.eup %2883  ;;  %v60_v62 = vld [vmem:[%s3395_s2 + $0x48] sm:$0xff]  ;;  %v2446_v36 = vld [vmem:[%s3395_s2 + $0xa2] ss:$0 sm:$0xff] }
 0x4eb   :  { %v494_v41 = vmul.f32 %v2884_v40, %v489_v0  ;;  %v61_v0 = vld [vmem:[%s3395_s2 + $0x50] sm:$0xff] }
 0x4ec   :  { %v2792_v2 = vpack.c.bf16 %v62_v1, %v61_v0 }
 0x515   :  { %v743_v25 = vpop.f32.mrb[4].mxu0 }
 0x516   :  { %v823_v26 = vmul.f32 %v2878_v24, %v743_v25  ;;  %v2622_v27 = vpop.f32.mrb[5].mxu0  ;;  %v2796_v24 = vpack.c.bf16 %v64_v23, %v63_v22  ;;  %v65_v25 = vld [vmem:[%s3395_s2 + $0x70] sm:$0xff] }
 0x517   :  { %v67_v27 = vld [vmem:[%s3395_s2 + $0x80] sm:$0xff] }
 0x518   :  { %827 = vrot.lane.b32.xlu0 %v823_v26, %s2957_s12  ;;  %v66_v26 = vld [vmem:[%s3395_s2 + $0x78] sm:$0xff]  ;;  %2797 = vmatprep.subr.bf16.mxu0 %v2796_v24 }
 0x51f   :  { %v819_v29 = vpop.f32.mrb[10].mxu1 }
 0x520   :  { %v824_v31 = vmul.f32 %v2880_v28, %v819_v29  ;;  %v2627_v32 = vpop.f32.mrb[11].mxu1  ;;  %v2800_v28 = vpack.c.bf16 %v66_v26, %v65_v25  ;;  %v68_v29 = vld [vmem:[%s3395_s2 + $0x88] sm:$0xff] }
 0x521   :  { %v69_v32 = vld [vmem:[%s3395_s2 + $0x90] sm:$0xff] }
 0x522   :  { %829 = vrot.lane.b32.xlu1 %v824_v31, %s2957_s12  ;;  %v2804_v31 = vpack.c.bf16 %v68_v29, %v67_v27  ;;  %v2808_v34 = vpack.c.bf16 %v70_v33, %v69_v32  ;;  %v2453_v33 = vld [vmem:[%s3395_s2 + $0xa7] ss:$0 sm:$0xff] }
 0x58a   :  { %v828_v38 = vpop.permute.xlu0 %827 }
 0x58b   :  { %v833_v39 = vsel %vm168_vm2, %v493_v37, %v828_v38 }
 0x58c   :  { %2636 = vmatprep.mubr.msk.f32.mxu0 %vm83_vm0, %v833_v39 }
 0x594   :  { %v830_v42 = vpop.permute.xlu1 %829 }
 0x595   :  { %v834_v43 = vsel %vm168_vm2, %v494_v41, %v830_v42 }
 0x596   :  { %2637 = vmatmul.mubr.msk.f32.vlgmr.msra.gmra.mrb[6].mxu0 %vm83_vm0, %v834_v43 }
 0x597   :  { %2799 = vmatpush3.bf16.msra.mxu0 %v2796_v24 }
 0x598   :  { %2801 = vmatprep.subr.bf16.mxu0 %v2800_v28 }
 0x59b   :  { %2803 = vmatpush3.bf16.msra.mxu0 %v2800_v28  ;;  %v2452_v28 = vld [vmem:[%s3395_s2 + $0xa6] ss:$0 sm:$0xff] }
 0x59c   :  { %2805 = vmatprep.subr.bf16.mxu0 %v2804_v31 }
 0x59f   :  { %2807 = vmatpush3.bf16.msra.mxu0 %v2804_v31 }
 0x5a0   :  { %2809 = vmatprep.subr.bf16.mxu0 %v2808_v34 }
 0x5a3   :  { %2811 = vmatpush3.bf16.msra.mxu0 %v2808_v34 }
 0x5a4   :  { %2690 = vmatprep.subr.mxu0 %v2949_v8 }
 0x669   :  { %v2638_v45 = vpop.f32.mrb[6].mxu0 }
 0x66a   :  { %v917_v46 = vadd.f32 %v2638_v45, %v2441_v44  ;;  %v911_v47 = vpop.f32.mrb[7].mxu0 }
 0x66b   :  { %v912_v48 = vadd.f32 %v2441_v44, %v911_v47 }
 0x66c   :  { %v921_v49 = vadd.f32 %v917_v46, %v3002_v7 }
 0x66d   :  { %v920_v50 = vadd.f32 %v912_v48, %v2995_v5  ;;  %v59_v5 = vld [vmem:[%s3395_s2 + $0x40] sm:$0xff] }
 0x66e   :  { %v925_v51 = vsel %vm83_vm0, %v921_v49, 0.0  ;;  %v2788_v63 = vpack.c.bf16 %v60_v62, %v59_v5 }
 0x66f   :  { %926 = vadd.xlane.f32.xlu0 %v925_v51  ;;  %v922_v52 = vsel %vm83_vm0, %v920_v50, 0.0 }
 0x670   :  { %923 = vadd.xlane.f32.xlu1 %v922_v52  ;;  %2789 = vmatprep.subr.bf16.mxu1 %v2788_v63 }
 0x671   :  { %2791 = vmatpush3.bf16.msra.mxu1 %v2788_v63 }
 0x672   :  { %2793 = vmatprep.subr.bf16.mxu1 %v2792_v2 }
 0x675   :  { %2795 = vmatpush3.bf16.msra.mxu1 %v2792_v2 }
 0x6fc   :  { %v927_v53 = vpop.xlane.xlu0 %926 }
 0x6fd   :  { %v930_v54 = vmul.f32 0.03125, %v927_v53  ;;  %v924_v55 = vpop.xlane.xlu1 %923 }
 0x6fe   :  { %v929_v56 = vmul.f32 0.03125, %v924_v55 }
 0x6ff   :  { %v932_v57 = vsub.f32 %v921_v49, %v930_v54 }
 0x700   :  { %v931_v58 = vsub.f32 %v920_v50, %v929_v56 }
 0x701   :  { %v934_v59 = vmul.f32 %v932_v57, %v932_v57 }
 0x702   :  { %v933_v60 = vmul.f32 %v931_v58, %v931_v58 }
 0x703   :  { %v938_v61 = vsel %vm83_vm0, %v934_v59, 0.0  ;;  %v2449_v59 = vld [vmem:[%s3395_s2 + $0xa3] ss:$0 sm:$0xff] }
 0x704   :  { %939 = vadd.xlane.f32.xlu1 %v938_v61  ;;  %v935_v7 = vsel %vm83_vm0, %v933_v60, 0.0 }
 0x705   :  { %936 = vadd.xlane.f32.xlu0 %v935_v7 }
 0x791   :  { %v940_v3 = vpop.xlane.xlu1 %939 }
 0x792   :  { %v942_v4 = vmul.f32 0.03125, %v940_v3  ;;  %v937_v6 = vpop.xlane.xlu0 %936 }
 0x793   :  { %v941_v9 = vmul.f32 0.03125, %v937_v6 }
 0x794   :  { %v944_v10 = vadd.f32 1e-12, %v942_v4 }
 0x795   :  { %v943_v11 = vadd.f32 1e-12, %v941_v9 }
 0x796   :  { %2885 = vrsqrt.f32 %v944_v10 }
 0x797   :  { %2887 = vrsqrt.f32 %v943_v11 }
 0x7a0   :  { %v2886_v13 = vpop.eup %2885 }
 0x7a1   :  { %v2888_v15 = vpop.eup %2887  ;;  %v948_v16 = vmul.f32 %v2886_v13, %v932_v57 }
 0x7a2   :  { %v947_v17 = vmul.f32 %v2888_v15, %v931_v58 }
 0x7a3   :  { %v954_v18 = vmul.f32 %v2444_v14, %v948_v16  ;;  %v1190_v16 = vld [vmem:[%s3395_s2 + $0xa8] sm:$0xff] }
 0x7a4   :  { %v953_v19 = vmul.f32 %v2444_v14, %v947_v17  ;;  %v1191_v17 = vld [vmem:[%s3395_s2 + $0xb0] sm:$0xff] }
 0x7a5   :  { %v960_v21 = vadd.f32 %v2445_v12, %v954_v18  ;;  %v1192_v18 = vld [vmem:[%s3395_s2 + $0xb8] sm:$0xff] }
 0x7a6   :  { %v959_v20 = vadd.f32 %v2445_v12, %v953_v19  ;;  %v2812_v12 = vpack.c.bf16 %v1191_v17, %v1190_v16  ;;  %v1193_v19 = vld [vmem:[%s3395_s2 + $0xc0] sm:$0xff] }
 0x7a8   :  { %2647 = vmatprep.mubr.msk.f32.mxu1 %vm83_vm0, %v959_v20  ;;  %2813 = vmatprep.subr.bf16.mxu1 %v2812_v12 }
 0x7a9   :  { %2648 = vmatmul.mubr.msk.f32.vlgmr.msra.gmra.mrb[12].mxu1 %vm83_vm0, %v960_v21 }
 0x7aa   :  { %2815 = vmatpush3.bf16.msra.mxu1 %v2812_v12 }
 0x87c   :  { %v2649_v37 = vpop.f32.mrb[12].mxu1 }
 0x87d   :  { %v1043_v38 = vadd.f32 %v2649_v37, %v2446_v36  ;;  %v1037_v39 = vpop.f32.mrb[13].mxu1 }
 0x87e   :  { %v1038_v40 = vadd.f32 %v2446_v36, %v1037_v39  ;;  %v2454_v39 = vld [vmem:[%s3395_s2 + $0x148] ss:$0 sm:$0xff] }
 0x87f   :  { %v1049_v41 = vmul.f32 0.044715, %v1043_v38  ;;  %v1047_v56 = vmul.f32 0.5, %v1043_v38 }
 0x880   :  { %v1048_v42 = vmul.f32 0.044715, %v1038_v40  ;;  %v1046_v54 = vmul.f32 0.5, %v1038_v40 }
 0x881   :  { %v1051_v43 = vmul.f32 %v1049_v41, %v1043_v38 }
 0x882   :  { %v1050_v44 = vmul.f32 %v1048_v42, %v1038_v40 }
 0x883   :  { %v1053_v45 = vmul.f32 %v1051_v43, %v1043_v38 }
 0x884   :  { %v1052_v46 = vmul.f32 %v1050_v44, %v1038_v40 }
 0x885   :  { %v1055_v47 = vadd.f32 %v1053_v45, %v1043_v38 }
 0x886   :  { %v1054_v48 = vadd.f32 %v1052_v46, %v1038_v40 }
 0x887   :  { %v1057_v49 = vmul.f32 0.7978846, %v1055_v47 }
 0x888   :  { %v1056_v50 = vmul.f32 0.7978846, %v1054_v48 }
 0x889   :  { %2889 = vtanh.f32 %v1057_v49 }
 0x88a   :  { %2891 = vtanh.f32 %v1056_v50 }
 0x893   :  { %v2890_v51 = vpop.eup %2889 }
 0x894   :  { %v2892_v52 = vpop.eup %2891  ;;  %v1061_v53 = vadd.f32 1.0, %v2890_v51 }
 0x895   :  { %v1060_v55 = vadd.f32 1.0, %v2892_v52 }
 0x896   :  { %v1063_v58 = vmul.f32 %v1061_v53, %v1047_v56 }
 0x897   :  { %v1062_v57 = vmul.f32 %v1060_v55, %v1046_v54 }
 0x899   :  { %2666 = vmatprep.mubr.msk.f32.mxu0 %vm1068_vm4, %v1062_v57 }
 0x89a   :  { %2667 = vmatmul.mubr.msk.f32.vlgmr.msra.gmra.mrb[8].mxu0 %vm1068_vm4, %v1063_v58 }
 0x89b   :  { %2692 = vmatprep.mubr.msk.f32.mxu0 %vm2950_vm1, %v2949_v8 }
 0x96d   :  { %v2668_v60 = vpop.f32.mrb[8].mxu0 }
 0x96e   :  { %v1147_v61 = vadd.f32 %v2668_v60, %v2449_v59  ;;  %v1141_v7 = vpop.f32.mrb[9].mxu0 }
 0x96f   :  { %v1142_v5 = vadd.f32 %v2449_v59, %v1141_v7 }
 0x970   :  { %v1151_v62 = vadd.f32 %v1147_v61, %v960_v21 }
 0x971   :  { %v1150_v63 = vadd.f32 %v1142_v5, %v959_v20  ;;  %v2816_v20 = vpack.c.bf16 %v1193_v19, %v1192_v18 }
 0x972   :  { %v1155_v0 = vsel %vm83_vm0, %v1151_v62, 0.0 }
 0x973   :  { %1156 = vadd.xlane.f32.xlu1 %v1155_v0  ;;  %v1152_v1 = vsel %vm83_vm0, %v1150_v63, 0.0  ;;  %2817 = vmatprep.subr.bf16.mxu1 %v2816_v20 }
 0x974   :  { %1153 = vadd.xlane.f32.xlu0 %v1152_v1  ;;  %2819 = vmatpush3.bf16.msra.mxu1 %v2816_v20 }
 0x975   :  { %2680 = vmatprep.subr.mxu1 %v2949_v8 }
 0xa00   :  { %v1157_v2 = vpop.xlane.xlu1 %1156 }
 0xa01   :  { %v1159_v3 = vmul.f32 0.03125, %v1157_v2  ;;  %v1154_v4 = vpop.xlane.xlu0 %1153 }
 0xa02   :  { %v1158_v6 = vmul.f32 0.03125, %v1154_v4 }
 0xa03   :  { %v1161_v9 = vsub.f32 %v1151_v62, %v1159_v3 }
 0xa04   :  { %v1160_v10 = vsub.f32 %v1150_v63, %v1158_v6 }
 0xa05   :  { %v1163_v11 = vmul.f32 %v1161_v9, %v1161_v9 }
 0xa06   :  { %v1162_v13 = vmul.f32 %v1160_v10, %v1160_v10 }
 0xa07   :  { %v1167_v14 = vsel %vm83_vm0, %v1163_v11, 0.0 }
 0xa08   :  { %1168 = vadd.xlane.f32.xlu1 %v1167_v14  ;;  %v1164_v15 = vsel %vm83_vm0, %v1162_v13, 0.0 }
 0xa09   :  { %1165 = vadd.xlane.f32.xlu0 %v1164_v15 }
 0xa95   :  { %v1169_v21 = vpop.xlane.xlu1 %1168 }
 0xa96   :  { %v1171_v22 = vmul.f32 0.03125, %v1169_v21  ;;  %v1166_v23 = vpop.xlane.xlu0 %1165 }
 0xa97   :  { %v1170_v24 = vmul.f32 0.03125, %v1166_v23 }
 0xa98   :  { %v1173_v25 = vadd.f32 1e-12, %v1171_v22 }
 0xa99   :  { %v1172_v26 = vadd.f32 1e-12, %v1170_v24 }
 0xa9a   :  { %2893 = vrsqrt.f32 %v1173_v25 }
 0xa9b   :  { %2895 = vrsqrt.f32 %v1172_v26 }
 0xaa4   :  { %v2894_v27 = vpop.eup %2893 }
 0xaa5   :  { %v2896_v29 = vpop.eup %2895  ;;  %v1177_v31 = vmul.f32 %v2894_v27, %v1161_v9 }
 0xaa6   :  { %v1176_v32 = vmul.f32 %v2896_v29, %v1160_v10  ;;  %v1194_v29 = vld [vmem:[%s3395_s2 + $0xc8] sm:$0xff] }
 0xaa7   :  { %v1183_v34 = vmul.f32 %v2452_v28, %v1177_v31  ;;  %v1195_v31 = vld [vmem:[%s3395_s2 + $0xd0] sm:$0xff] }
 0xaa8   :  { %v1182_v36 = vmul.f32 %v2452_v28, %v1176_v32  ;;  %v2820_v32 = vpack.c.bf16 %v1195_v31, %v1194_v29 }
 0xaa9   :  { %v3189_v38 = vadd.f32 %v2453_v33, %v1183_v34  ;;  %v1196_v34 = vld [vmem:[%s3395_s2 + $0xd8] sm:$0xff] }
 0xaaa   :  { %v3187_v37 = vadd.f32 %v2453_v33, %v1182_v36  ;;  %v1197_v36 = vld [vmem:[%s3395_s2 + $0xe0] sm:$0xff] }
 0xaac   :  { %2677 = vmatprep.mubr.msk.f32.mxu1 %vm83_vm0, %v3187_v37 }
 0xaad   :  { %2678 = vmatmul.mubr.msk.f32.vlgmr.msra.gmra.mrb[14].mxu1 %vm83_vm0, %v3189_v38 }
 0xaae   :  { %2682 = vmatprep.mubr.msk.f32.mxu1 %vm2950_vm1, %v2949_v8 }
 0xb80   :  { %v2679_v40 = vpop.f32.mrb[14].mxu1 }
 0xb81   :  { %v3200_v41 = vadd.f32 %v2679_v40, %v2454_v39  ;;  %v1294_v42 = vpop.f32.mrb[15].mxu1 }
 0xb82   :  { %v3202_v43 = vadd.f32 %v2454_v39, %v1294_v42  ;;  %v2824_v39 = vpack.c.bf16 %v1197_v36, %v1196_v34  ;;  %v1202_v34 = vld [vmem:[%s3395_s2 + $0x108] sm:$0xff]  ;;  %v1203_v36 = vld [vmem:[%s3395_s2 + $0x110] sm:$0xff] }
 0xb83   :  { %1381 = vrot.lane.b32.xlu1 %v3200_v41, %s2951_s0 }
 0xb84   :  { %1304 = vrot.lane.b32.xlu0 %v3202_v43, %s2951_s0  ;;  %s2925_s0 = scalar_lea.vmem %s2418_s14, 32 }
 0xb85   :  { %p2926_p0 = scmp.ne.s32.totalorder %s2418_s14, %s2925_s0  ;;  %p2931_p2 = scmp.lt.s32.totalorder %s2925_s0, %s2925_s0 }
 0xb87   :  { %1553 = vrot.lane.b32.xlu1 %v3200_v41, %s2952_s26  ;;  %p2932_p3 = por %p2931_p2, %p2930_p1 }
 0xb88   :  { %1477 = vrot.lane.b32.xlu0 %v3202_v43, %s2952_s26 }
 0xb89   :  { %p2933_p4 = pnand %p2932_p3, %p2926_p0 }
 0xb8b   :  { %1633 = vrot.lane.b32.xlu1 %v3202_v43, %s2953_s27 }
 0xbf5   :  { %v1382_v45 = vpop.permute.xlu1 %1381 }
 0xbf6   :  { %v1305_v44 = vpop.permute.xlu0 %1304 }
 0xbf7   :  { %2681 = vmatpush3.xpose.msk.msra.mxu1 %vm168_vm2, %v1305_v44 }
 0xbf8   :  { %2685 = vmatprep.subr.mxu1 %v2949_v8 }
 0xbf9   :  { %v1554_v47 = vpop.permute.xlu1 %1553 }
 0xbfa   :  { %2683 = vmatmul.mubr.msk.f32.vlgmr.msra.gmra.mrb[16].mxu1 %vm168_vm2, %v3202_v43  ;;  %v1478_v46 = vpop.permute.xlu0 %1477 }
 0xbfb   :  { %2686 = vmatpush3.xpose.msk.msra.mxu1 %vm168_vm2, %v1382_v45  ;;  %2691 = vmatpush3.msra.mxu0 %v1478_v46 }
 0xbfc   :  { %2687 = vmatprep.mubr.msk.f32.mxu1 %vm2950_vm1, %v2949_v8  ;;  %2695 = vmatprep.subr.mxu1 %v2949_v8 }
 0xbfd   :  { %2700 = vmatprep.subr.mxu0 %v2949_v8  ;;  %v1634_v56 = vpop.permute.xlu1 %1633 }
 0xbfe   :  { %2688 = vmatmul.mubr.msk.f32.vlgmr.msra.gmra.mrb[18].mxu1 %vm168_vm2, %v3200_v41 }
 0xbff   :  { %2696 = vmatpush3.msra.mxu1 %v1554_v47  ;;  %2697 = vmatprep.mubr.msk.f32.mxu1 %vm2950_vm1, %v2949_v8 }
 0xc00   :  { %2705 = vmatprep.subr.mxu1 %v2949_v8 }
 0xccd   :  { %v1376_v48 = vpop.f32.mrb[16].mxu1 }
 0xcce   :  { %v1377_v49 = vadd.f32 %v1376_v48, %v3048_v30  ;;  %v2684_v50 = vpop.f32.mrb[17].mxu1 }
 0xcd0   :  { %v1457_v51 = vsel %vm320_vm3, %v1377_v49, -inf }
 0xcd1   :  { %1458 = vmax.xlane.f32.xlu1 %v1457_v51  ;;  %v1453_v52 = vpop.f32.mrb[18].mxu1 }
 0xcd2   :  { %v1454_v53 = vadd.f32 %v1453_v52, %v3051_v35  ;;  %v2689_v54 = vpop.f32.mrb[19].mxu1 }
 0xcd4   :  { %v1460_v55 = vsel %vm320_vm3, %v1454_v53, -inf }
 0xcd5   :  { %1461 = vmax.xlane.f32.xlu0 %v1460_v55 }
 0xce2   :  { %1631 = vrot.lane.b32.xlu1 %v3202_v43, %s2954_s28 }
 0xceb   :  { %1711 = vrot.lane.b32.xlu0 %v3200_v41, %s2953_s27 }
 0xcef   :  { %1709 = vrot.lane.b32.xlu0 %v3200_v41, %s2954_s28 }
 0xd5e   :  { %v1459_v57 = vpop.xlane.xlu1 %1458 }
 0xd5f   :  { %v1463_v58 = vsub.f32 %v1377_v49, %v1459_v57 }
 0xd61   :  { %v1465_v59 = vmul.f32 1.442695, %v1463_v58 }
 0xd62   :  { %v1462_v60 = vpop.xlane.xlu0 %1461  ;;  %v1632_v0 = vpop.permute.xlu1 %1631 }
 0xd63   :  { %2897 = vpow2.f32 %v1465_v59  ;;  %v1464_v61 = vsub.f32 %v1454_v53, %v1462_v60  ;;  %v2469_v59 = vld [vmem:[%s3395_s2 + $0x149] ss:$0 sm:$0xff] }
 0xd65   :  { %v1467_v7 = vmul.f32 1.442695, %v1464_v61 }
 0xd66   :  { %v1712_v62 = vpop.permute.xlu0 %1711 }
 0xd67   :  { %2899 = vpow2.f32 %v1467_v7 }
 0xd6a   :  { %v1710_v1 = vpop.permute.xlu0 %1709 }
 0xd6d   :  { %v2898_v5 = vpop.eup %2897 }
 0xd6e   :  { %2693 = vmatmul.mubr.msk.f32.vlgmr.msra.gmra.mrb[10].mxu0 %vm320_vm3, %v2898_v5  ;;  %v1469_v28 = vsel %vm320_vm3, %v2898_v5, 0.0 }
 0xd6f   :  { %2701 = vmatpush3.xpose.msk.msra.mxu0 %vm168_vm2, %v1634_v56  ;;  %2702 = vmatprep.mubr.msk.f32.mxu0 %vm2950_vm1, %v2949_v8 }
 0xd70   :  { %2710 = vmatprep.subr.mxu0 %v2949_v8 }
 0xd71   :  { %v2900_v63 = vpop.eup %2899 }
 0xd72   :  { %2698 = vmatmul.mubr.msk.f32.vlgmr.msra.gmra.mrb[20].mxu1 %vm320_vm3, %v2900_v63  ;;  %2703 = vmatmul.mubr.msk.f32.vlgmr.msra.gmra.mrb[12].mxu0 %vm168_vm2, %v1632_v0  ;;  %v1472_v26 = vsel %vm320_vm3, %v2900_v63, 0.0 }
 0xd73   :  { %2706 = vmatpush3.xpose.msk.msra.mxu1 %vm168_vm2, %v1712_v62  ;;  %2707 = vmatprep.mubr.msk.f32.mxu1 %vm2950_vm1, %v2949_v8 }
 0xd74   :  { %2715 = vmatprep.subr.mxu1 %v2949_v8  ;;  %2712 = vmatprep.mubr.msk.f32.mxu0 %vm2950_vm1, %v2949_v8 }
 0xd76   :  { %2708 = vmatmul.mubr.msk.f32.vlgmr.msra.gmra.mrb[22].mxu1 %vm168_vm2, %v1710_v1 }
 0xd77   :  { %2717 = vmatprep.mubr.msk.f32.mxu1 %vm2950_vm1, %v2949_v8 }
 0xe41   :  { %v3254_v2 = vpop.f32.mrb[10].mxu0 }
 0xe42   :  { %v2694_v3 = vpop.f32.mrb[11].mxu0 }
 0xe45   :  { %v3256_v4 = vpop.f32.mrb[20].mxu1  ;;  %v1705_v6 = vpop.f32.mrb[12].mxu0 }
 0xe46   :  { %v1706_v9 = vadd.f32 %v1705_v6, %v3048_v30  ;;  %v2699_v10 = vpop.f32.mrb[21].mxu1  ;;  %v2704_v11 = vpop.f32.mrb[13].mxu0 }
 0xe48   :  { %v1787_v13 = vsel %vm320_vm3, %v1706_v9, -inf }
 0xe49   :  { %1788 = vmax.xlane.f32.xlu1 %v1787_v13  ;;  %v1783_v14 = vpop.f32.mrb[22].mxu1 }
 0xe4a   :  { %v1784_v15 = vadd.f32 %v1783_v14, %v3051_v35  ;;  %v2709_v16 = vpop.f32.mrb[23].mxu1 }
 0xe4c   :  { %v1790_v17 = vsel %vm320_vm3, %v1784_v15, -inf }
 0xe4d   :  { %1791 = vmax.xlane.f32.xlu0 %v1790_v17  ;;  %v1200_v17 = vld [vmem:[%s3395_s2 + $0xf8] sm:$0xff] }
 0xe5a   :  { %1883 = vrot.lane.b32.xlu1 %v3200_v41, %s2956_s1 }
 0xe63   :  { %1807 = vrot.lane.b32.xlu0 %v3202_v43, %s2956_s1 }
 0xed6   :  { %v1789_v12 = vpop.xlane.xlu1 %1788 }
 0xed7   :  { %v1793_v30 = vsub.f32 %v1706_v9, %v1789_v12  ;;  %v1201_v12 = vld [vmem:[%s3395_s2 + $0x100] sm:$0xff] }
 0xed9   :  { %v1795_v18 = vmul.f32 1.442695, %v1793_v30  ;;  %v2832_v30 = vpack.c.bf16 %v1201_v12, %v1200_v17 }
 0xeda   :  { %v1884_v19 = vpop.permute.xlu1 %1883  ;;  %v1792_v20 = vpop.xlane.xlu0 %1791 }
 0xedb   :  { %2901 = vpow2.f32 %v1795_v18  ;;  %v1794_v21 = vsub.f32 %v1784_v15, %v1792_v20  ;;  %2716 = vmatpush3.msra.mxu1 %v1884_v19  ;;  %v1199_v15 = vld [vmem:[%s3395_s2 + $0xf0] sm:$0xff] }
 0xedd   :  { %v1797_v22 = vmul.f32 1.442695, %v1794_v21 }
 0xede   :  { %v1808_v35 = vpop.permute.xlu0 %1807 }
 0xedf   :  { %2903 = vpow2.f32 %v1797_v22  ;;  %2711 = vmatpush3.msra.mxu0 %v1808_v35 }
 0xee0   :  { %2821 = vmatprep.subr.bf16.mxu0 %v2820_v32 }
 0xee5   :  { %v2902_v23 = vpop.eup %2901 }
 0xee6   :  { %2713 = vmatmul.mubr.msk.f32.vlgmr.msra.gmra.mrb[14].mxu0 %vm320_vm3, %v2902_v23  ;;  %v1799_v24 = vsel %vm320_vm3, %v2902_v23, 0.0 }
 0xee7   :  { %1800 = vadd.xlane.f32.xlu1 %v1799_v24  ;;  %2823 = vmatpush3.bf16.msra.mxu0 %v2820_v32  ;;  %v2472_v24 = vld [vmem:[%s3395_s2 + $0x14c] ss:$0 sm:$0xff] }
 0xee8   :  { %2825 = vmatprep.subr.bf16.mxu0 %v2824_v39 }
 0xee9   :  { %v2904_v25 = vpop.eup %2903 }
 0xeea   :  { %2718 = vmatmul.mubr.msk.f32.vlgmr.msra.gmra.mrb[24].mxu1 %vm320_vm3, %v2904_v25  ;;  %v1802_v27 = vsel %vm320_vm3, %v2904_v25, 0.0 }
 0xeeb   :  { %1473 = vadd.xlane.f32.xlu1 %v1472_v26  ;;  %1803 = vadd.xlane.f32.xlu0 %v1802_v27 }
 0xeec   :  { %2827 = vmatpush3.bf16.msra.mxu0 %v2824_v39  ;;  %v2836_v39 = vpack.c.bf16 %v1203_v36, %v1202_v34 }
 0xeee   :  { %2837 = vmatprep.subr.bf16.mxu0 %v2836_v39 }
 0xeef   :  { %1470 = vadd.xlane.f32.xlu0 %v1469_v28  ;;  %v2473_v28 = vld [vmem:[%s3395_s2 + $0x14d] ss:$0 sm:$0xff] }
 0xf74   :  { %v1801_v33 = vpop.xlane.xlu1 %1800 }
 0xf75   :  { %2905 = vrcp.f32 %v1801_v33 }
 0xf78   :  { %v1804_v40 = vpop.xlane.xlu0 %1803  ;;  %v1474_v50 = vpop.xlane.xlu1 %1473 }
 0xf79   :  { %2907 = vrcp.f32 %v1804_v40  ;;  %v1204_v40 = vld [vmem:[%s3395_s2 + $0x118] sm:$0xff] }
 0xf7c   :  { %v1471_v49 = vpop.xlane.xlu0 %1470 }
 0xf7d   :  { %2909 = vrcp.f32 %v1471_v49 }
 0xf7e   :  { %2911 = vrcp.f32 %v1474_v50 }
 0xf7f   :  { %v2906_v41 = vpop.eup %2905 }
 0xf83   :  { %v2908_v45 = vpop.eup %2907 }
 0xf87   :  { %v2910_v51 = vpop.eup %2909 }
 0xf88   :  { %v1629_v52 = vmul.f32 %v2910_v51, %v3254_v2  ;;  %v2912_v53 = vpop.eup %2911 }
 0xf89   :  { %v1630_v56 = vmul.f32 %v2912_v53, %v3256_v4 }
 0xfb9   :  { %v1879_v42 = vpop.f32.mrb[14].mxu0 }
 0xfba   :  { %v1959_v43 = vmul.f32 %v2906_v41, %v1879_v42  ;;  %v2714_v44 = vpop.f32.mrb[15].mxu0  ;;  %v1205_v41 = vld [vmem:[%s3395_s2 + $0x120] sm:$0xff] }
 0xfbb   :  { %v2840_v42 = vpack.c.bf16 %v1205_v41, %v1204_v40  ;;  %v2480_v41 = vld [vmem:[%s3395_s2 + $0x14e] ss:$0 sm:$0xff] }
 0xfbc   :  { %1963 = vrot.lane.b32.xlu0 %v1959_v43, %s2957_s12  ;;  %v1207_v43 = vld [vmem:[%s3395_s2 + $0x130] sm:$0xff] }
 0xfbd   :  { %v1955_v46 = vpop.f32.mrb[24].mxu1 }
 0xfbe   :  { %v1960_v47 = vmul.f32 %v2908_v45, %v1955_v46  ;;  %v2719_v48 = vpop.f32.mrb[25].mxu1  ;;  %v1208_v45 = vld [vmem:[%s3395_s2 + $0x138] sm:$0xff]  ;;  %v1209_v46 = vld [vmem:[%s3395_s2 + $0x140] sm:$0xff] }
 0xfbf   :  { %v2474_v48 = vld [vmem:[%s3395_s2 + $0x14a] ss:$0 sm:$0xff] }
 0xfc0   :  { %1965 = vrot.lane.b32.xlu1 %v1960_v47, %s2957_s12  ;;  %v2848_v47 = vpack.c.bf16 %v1209_v46, %v1208_v45 }
0x102e   :  { %v1964_v54 = vpop.permute.xlu0 %1963 }
0x102f   :  { %v1969_v55 = vsel %vm168_vm2, %v1629_v52, %v1964_v54 }
0x1030   :  { %2728 = vmatprep.mubr.msk.f32.mxu0 %vm83_vm0, %v1969_v55 }
0x1032   :  { %v1966_v57 = vpop.permute.xlu1 %1965 }
0x1033   :  { %v1970_v58 = vsel %vm168_vm2, %v1630_v56, %v1966_v57 }
0x1034   :  { %2729 = vmatmul.mubr.msk.f32.vlgmr.msra.gmra.mrb[16].mxu0 %vm83_vm0, %v1970_v58 }
0x1035   :  { %2839 = vmatpush3.bf16.msra.mxu0 %v2836_v39 }
0x1036   :  { %2841 = vmatprep.subr.bf16.mxu0 %v2840_v42 }
0x1039   :  { %2843 = vmatpush3.bf16.msra.mxu0 %v2840_v42 }
0x1107   :  { %v2730_v60 = vpop.f32.mrb[16].mxu0 }
0x1108   :  { %v2053_v61 = vadd.f32 %v2730_v60, %v2469_v59  ;;  %v2047_v7 = vpop.f32.mrb[17].mxu0 }
0x1109   :  { %v2048_v5 = vadd.f32 %v2469_v59, %v2047_v7 }
0x110a   :  { %v2057_v62 = vadd.f32 %v2053_v61, %v3189_v38 }
0x110b   :  { %v2056_v63 = vadd.f32 %v2048_v5, %v3187_v37  ;;  %v1198_v37 = vld [vmem:[%s3395_s2 + $0xe8] sm:$0xff] }
0x110c   :  { %v2061_v0 = vsel %vm83_vm0, %v2057_v62, 0.0  ;;  %v2828_v16 = vpack.c.bf16 %v1199_v15, %v1198_v37 }
0x110d   :  { %2062 = vadd.xlane.f32.xlu0 %v2061_v0  ;;  %v2058_v1 = vsel %vm83_vm0, %v2056_v63, 0.0 }
0x110e   :  { %2059 = vadd.xlane.f32.xlu1 %v2058_v1  ;;  %2829 = vmatprep.subr.bf16.mxu1 %v2828_v16 }
0x110f   :  { %2831 = vmatpush3.bf16.msra.mxu1 %v2828_v16 }
0x1110   :  { %2833 = vmatprep.subr.bf16.mxu1 %v2832_v30 }
0x1113   :  { %2835 = vmatpush3.bf16.msra.mxu1 %v2832_v30 }
0x119a   :  { %v2063_v2 = vpop.xlane.xlu0 %2062 }
0x119b   :  { %v2065_v3 = vmul.f32 0.03125, %v2063_v2  ;;  %v2060_v4 = vpop.xlane.xlu1 %2059 }
0x119c   :  { %v2064_v6 = vmul.f32 0.03125, %v2060_v4 }
0x119d   :  { %v2067_v9 = vsub.f32 %v2057_v62, %v2065_v3 }
0x119e   :  { %v2066_v10 = vsub.f32 %v2056_v63, %v2064_v6  ;;  %v2477_v6 = vld [vmem:[%s3395_s2 + $0x14b] ss:$0 sm:$0xff] }
0x119f   :  { %v2069_v11 = vmul.f32 %v2067_v9, %v2067_v9 }
0x11a0   :  { %v2068_v13 = vmul.f32 %v2066_v10, %v2066_v10 }
0x11a1   :  { %v2073_v14 = vsel %vm83_vm0, %v2069_v11, 0.0 }
0x11a2   :  { %2074 = vadd.xlane.f32.xlu1 %v2073_v14  ;;  %v2070_v38 = vsel %vm83_vm0, %v2068_v13, 0.0 }
0x11a3   :  { %2071 = vadd.xlane.f32.xlu0 %v2070_v38 }
0x122f   :  { %v2075_v18 = vpop.xlane.xlu1 %2074 }
0x1230   :  { %v2077_v19 = vmul.f32 0.03125, %v2075_v18  ;;  %v2072_v20 = vpop.xlane.xlu0 %2071 }
0x1231   :  { %v2076_v21 = vmul.f32 0.03125, %v2072_v20 }
0x1232   :  { %v2079_v22 = vadd.f32 1e-12, %v2077_v19 }
0x1233   :  { %v2078_v35 = vadd.f32 1e-12, %v2076_v21 }
0x1234   :  { %2913 = vrsqrt.f32 %v2079_v22 }
0x1235   :  { %2915 = vrsqrt.f32 %v2078_v35 }
0x123e   :  { %v2914_v23 = vpop.eup %2913 }
0x123f   :  { %v2916_v25 = vpop.eup %2915  ;;  %v2083_v26 = vmul.f32 %v2914_v23, %v2067_v9  ;;  %v2324_v23 = vld [vmem:[%s3395_s2 + $0x150] sm:$0xff] }
0x1240   :  { %v2082_v27 = vmul.f32 %v2916_v25, %v2066_v10 }
0x1241   :  { %v2089_v29 = vmul.f32 %v2472_v24, %v2083_v26  ;;  %v2326_v26 = vld [vmem:[%s3395_s2 + $0x160] sm:$0xff] }
0x1242   :  { %v2088_v31 = vmul.f32 %v2472_v24, %v2082_v27  ;;  %v2325_v24 = vld [vmem:[%s3395_s2 + $0x158] sm:$0xff]  ;;  %v2327_v27 = vld [vmem:[%s3395_s2 + $0x168] sm:$0xff] }
0x1243   :  { %v2095_v33 = vadd.f32 %v2473_v28, %v2089_v29  ;;  %v2853_v25 = vpack.c.bf16 %v2325_v24, %v2324_v23  ;;  %v2856_v29 = vpack.c.bf16 %v2327_v27, %v2326_v26 }
0x1244   :  { %v2094_v32 = vadd.f32 %v2473_v28, %v2088_v31  ;;  %v2958_v28 = vmov 0.0|0.0  }
0x1245   :  { %2852 = vmatprep.subr.bf16.mxu1 %v2958_v28 }
0x1246   :  { %2739 = vmatprep.mubr.msk.f32.mxu1 %vm83_vm0, %v2094_v32 }
0x1247   :  { %2740 = vmatmul.mubr.msk.f32.vlgmr.msra.gmra.mrb[26].mxu1 %vm83_vm0, %v2095_v33 }
0x1248   :  { %2769 = vmatprep.mubr.msk.f32.mxu1 %vm2950_vm1, %v2949_v8  ;;  %v1206_v8 = vld [vmem:[%s3395_s2 + $0x128] sm:$0xff]  ;;  %2854 = vmatpush3.bf16.msra.mxu1 %v2853_v25 }
0x1249   :  { %v2844_v44 = vpack.c.bf16 %v1207_v43, %v1206_v8  ;;  %2855 = vmatprep.subr.bf16.mxu1 %v2958_v28 }
0x124b   :  { %2845 = vmatprep.subr.bf16.mxu0 %v2844_v44 }
0x124c   :  { %2847 = vmatpush3.bf16.msra.mxu0 %v2844_v44  ;;  %2857 = vmatpush3.bf16.msra.mxu1 %v2856_v29  ;;  %v2481_v44 = vld [vmem:[%s3395_s2 + $0x14f] ss:$0 sm:$0xff] }
0x124d   :  { %2849 = vmatprep.subr.bf16.mxu0 %v2848_v47 }
0x1250   :  { %2851 = vmatpush3.bf16.msra.mxu0 %v2848_v47 }
0x131a   :  { %v2741_v49 = vpop.f32.mrb[26].mxu1 }
0x131b   :  { %v2178_v50 = vadd.f32 %v2741_v49, %v2474_v48  ;;  %v2172_v51 = vpop.f32.mrb[27].mxu1 }
0x131c   :  { %v2173_v52 = vadd.f32 %v2474_v48, %v2172_v51  ;;  %v2482_v51 = vld [vmem:[%s3395_s2 + $0x170] ss:$0 sm:$0xff] }
0x131d   :  { %v2184_v53 = vmul.f32 0.044715, %v2178_v50  ;;  %v2182_v2 = vmul.f32 0.5, %v2178_v50 }
0x131e   :  { %v2183_v54 = vmul.f32 0.044715, %v2173_v52  ;;  %v2181_v0 = vmul.f32 0.5, %v2173_v52 }
0x131f   :  { %v2186_v55 = vmul.f32 %v2184_v53, %v2178_v50 }
0x1320   :  { %v2185_v56 = vmul.f32 %v2183_v54, %v2173_v52 }
0x1321   :  { %v2188_v57 = vmul.f32 %v2186_v55, %v2178_v50 }
0x1322   :  { %v2187_v58 = vmul.f32 %v2185_v56, %v2173_v52 }
0x1323   :  { %v2190_v59 = vadd.f32 %v2188_v57, %v2178_v50 }
0x1324   :  { %v2189_v60 = vadd.f32 %v2187_v58, %v2173_v52 }
0x1325   :  { %v2192_v61 = vmul.f32 0.7978846, %v2190_v59 }
0x1326   :  { %v2191_v7 = vmul.f32 0.7978846, %v2189_v60 }
0x1327   :  { %2917 = vtanh.f32 %v2192_v61 }
0x1328   :  { %2919 = vtanh.f32 %v2191_v7 }
0x1331   :  { %v2918_v5 = vpop.eup %2917 }
0x1332   :  { %v2920_v62 = vpop.eup %2919  ;;  %v2196_v63 = vadd.f32 1.0, %v2918_v5 }
0x1333   :  { %v2195_v1 = vadd.f32 1.0, %v2920_v62 }
0x1334   :  { %v2198_v4 = vmul.f32 %v2196_v63, %v2182_v2 }
0x1335   :  { %v2197_v3 = vmul.f32 %v2195_v1, %v2181_v0 }
0x1337   :  { %2758 = vmatprep.mubr.msk.f32.mxu0 %vm1068_vm4, %v2197_v3 }
0x1338   :  { %2759 = vmatmul.mubr.msk.f32.vlgmr.msra.gmra.mrb[18].mxu0 %vm1068_vm4, %v2198_v4 }
0x140b   :  { %v2760_v9 = vpop.f32.mrb[18].mxu0 }
0x140c   :  { %v2281_v10 = vadd.f32 %v2760_v9, %v2477_v6  ;;  %v2275_v11 = vpop.f32.mrb[19].mxu0 }
0x140d   :  { %v2276_v13 = vadd.f32 %v2477_v6, %v2275_v11 }
0x140e   :  { %v2285_v14 = vadd.f32 %v2281_v10, %v2095_v33 }
0x140f   :  { %v2284_v38 = vadd.f32 %v2276_v13, %v2094_v32 }
0x1410   :  { %v2289_v37 = vsel %vm83_vm0, %v2285_v14, 0.0 }
0x1411   :  { %2290 = vadd.xlane.f32.xlu0 %v2289_v37  ;;  %v2286_v15 = vsel %vm83_vm0, %v2284_v38, 0.0 }
0x1412   :  { %2287 = vadd.xlane.f32.xlu1 %v2286_v15 }
0x149e   :  { %v2291_v16 = vpop.xlane.xlu0 %2290 }
0x149f   :  { %v2293_v17 = vmul.f32 0.03125, %v2291_v16  ;;  %v2288_v12 = vpop.xlane.xlu1 %2287 }
0x14a0   :  { %v2292_v30 = vmul.f32 0.03125, %v2288_v12 }
0x14a1   :  { %v2295_v18 = vsub.f32 %v2285_v14, %v2293_v17 }
0x14a2   :  { %v2294_v19 = vsub.f32 %v2284_v38, %v2292_v30 }
0x14a3   :  { %v2297_v20 = vmul.f32 %v2295_v18, %v2295_v18 }
0x14a4   :  { %v2296_v21 = vmul.f32 %v2294_v19, %v2294_v19 }
0x14a5   :  { %v2301_v22 = vsel %vm83_vm0, %v2297_v20, 0.0 }
0x14a6   :  { %2302 = vadd.xlane.f32.xlu0 %v2301_v22  ;;  %v2298_v35 = vsel %vm83_vm0, %v2296_v21, 0.0 }
0x14a7   :  { %2299 = vadd.xlane.f32.xlu1 %v2298_v35 }
0x1533   :  { %v2303_v31 = vpop.xlane.xlu0 %2302 }
0x1534   :  { %v2305_v32 = vmul.f32 0.03125, %v2303_v31  ;;  %v2300_v33 = vpop.xlane.xlu1 %2299 }
0x1535   :  { %v2304_v34 = vmul.f32 0.03125, %v2300_v33 }
0x1536   :  { %v2307_v36 = vadd.f32 1e-12, %v2305_v32 }
0x1537   :  { %v2306_v39 = vadd.f32 1e-12, %v2304_v34 }
0x1538   :  { %2921 = vrsqrt.f32 %v2307_v36 }
0x1539   :  { %2923 = vrsqrt.f32 %v2306_v39 }
0x1542   :  { %v2922_v40 = vpop.eup %2921 }
0x1543   :  { %v2924_v42 = vpop.eup %2923  ;;  %v2311_v8 = vmul.f32 %v2922_v40, %v2295_v18 }
0x1544   :  { %v2310_v43 = vmul.f32 %v2924_v42, %v2294_v19 }
0x1545   :  { %v2317_v45 = vmul.f32 %v2480_v41, %v2311_v8 }
0x1546   :  { %v2316_v46 = vmul.f32 %v2480_v41, %v2310_v43 }
0x1547   :  { %v2323_v47 = vadd.f32 %v2481_v44, %v2317_v45 }
0x1548   :  { %v2322_v48 = vadd.f32 %v2481_v44, %v2316_v46 }
0x1549   :  { %v2335_v49 = vrot.slane %v2323_v47, 7 }
0x154b   :  { %v2337_v50 = vsel %vm2336_vm5, %v2335_v49, %v2322_v48 }
0x154c   :  { %2770 = vmatmul.mubr.msk.f32.vlgmr.msra.gmra.mrb[28].mxu1 %vm83_vm0, %v2337_v50 }
0x161f   :  { %v2406_v52 = vpop.f32.mrb[28].mxu1 }
0x1620   :  { %v2407_v53 = vadd.f32 %v2482_v51, %v2406_v52  ;;  %v2771_v54 = vpop.f32.mrb[29].mxu1 }
0x1622   :  { %2410 = vst [vmem:[#allocation2] sm:$0x3] %v2407_v53 }
0x1623   :  { %2936 = shalt.err (!%p2933_p4)
}
0x1624   :  { %s2937_s28 = scalar_lea.hbm %s3396_s3, 32 }
0x1625   :  { %p2938_p5 = scmp.ne.s32.totalorder %s3396_s3, %s2937_s28  ;;  %p2941_p6 = scmp.lt.u32.totalorder %s2937_s28, %s3396_s3 }
0x1627   :  { %p2943_p7 = pnand %p2941_p6, %p2938_p5 }
0x1629   :  { %2946 = shalt.err (!%p2943_p7)
}
0x162a   :  { %2420 = dma.vmem_to_hbm [thread:$0]  %s2418_s14, 32, %s3396_s3, [#allocation3]  }
0x162b   :  { %2947 = dma.done.wait [#allocation3], 32  }
0x162c   :  { %2948 = vsyncadd [#allocation3], 4294967264 }
0x162d   :  { %2424 = vsyncpa [#allocation3], 1 }

</bundles_post_ra>
